<compile_context>
chip_gen: v5e
topology: v5e:2x2
jax: 0.10.0
libtpu: 0.0.40
codegen_flags: <defaults>
</compile_context>

<pallas_src>
import jax
import jax.numpy as jnp
from jax import lax
from jax.experimental import pallas as pl
from jax.experimental.pallas import tpu as pltpu

N_IN = 32          # n_in of TriaffineScorer (small synthetic size)
N_OUT = 16         # n_out of the MLPs == n_in of Triaffine
N_OUT_LABEL = 1    # default; only this path is implemented
NEG_SLOPE = 0.1    # supar MLP uses LeakyReLU(negative_slope=0.1)

# TODO(synk): n_out_label > 1 path not implemented (would add a label grid axis).
# TODO(synk): for large S, add an x-tile grid axis (bounds the double-buffered
#             output block on v7x's 64 MiB VMEM) and raise vmem_limit_bytes on
#             v5e/v6e; unnecessary at these synthetic sizes.


def _triaffine_scorer_kernel(h_ref, wlmr_ref, blmr_ref, wjik_ref, out_ref):
    S = h_ref.shape[1]
    d = wjik_ref.shape[0]

    # Fused MLP: one (S, n_in) x (n_in, 3d) MXU matmul + bias + LeakyReLU.
    h = h_ref[0]                                                # (S, n_in)
    act = jnp.dot(h, wlmr_ref[...], preferred_element_type=jnp.float32)
    act = act + blmr_ref[...]                                   # (1, 3d) broadcasts
    act = jnp.where(act >= 0, act, NEG_SLOPE * act)

    left = act[:, 0:d]                                          # x features (S, d)
    mid = act[:, d:2 * d]                                       # y features (S, d)
    right = act[:, 2 * d:3 * d]                                 # z features (S, d)

    # q[y, i*d + k] = sum_j mid[y, j] * W_tri[i, k, j]
    # Single lane-dense MXU matmul against the pre-transposed (d, (d+1)*d) weight.
    q = jnp.dot(mid, wjik_ref[...], preferred_element_type=jnp.float32)   # (S, (d+1)*d)

    # g[x, y, k] = sum_i x_aug[x, i] * q[y, i*d + k];  i == d is the bias_x row
    # (x_aug[:, d] == 1).  VPU loop is over the small (S, S, d) intermediate,
    # not the S^3 output.
    g = jnp.broadcast_to(q[:, d * d:(d + 1) * d][None, :, :], (S, S, d))
    for i in range(d):
        g = g + left[:, i:i + 1][:, :, None] * q[:, i * d:(i + 1) * d][None, :, :]

    # S^3 stage as ONE MXU matmul: out[(x,y), z] = sum_k g[(x,y), k] * right[z, k].
    g2 = g.reshape(S * S, d)                                    # leading-dim collapse
    out2d = lax.dot_general(g2, right, (((1,), (1,)), ((), ())),
                            preferred_element_type=jnp.float32)  # (S*S, S)
    out_ref[0] = out2d.astype(out_ref.dtype)


def triaffine_scorer(h, wl, bl, wm, bm, wr, br, w_tri):
    """h: (B, S, n_in). Returns (B, S, S, S) == [b, x, y, z]."""
    B, S, n_in = h.shape
    d = wl.shape[0]
    d1 = d + 1

    # --- wrapper-side weight re-layout (free; keeps kernel matmuls plain
    #     row-major with lane-dense RHS, no in-kernel weight slicing) ---
    w_lmr = jnp.concatenate([wl, wm, wr], axis=0).T             # (n_in, 3d)
    b_lmr = jnp.concatenate([bl, bm, br], axis=0).reshape(1, 3 * d)
    # w_jik[j, i*d + k] = w_tri[0, i, k, j]
    w_jik = jnp.transpose(w_tri.reshape(d1, d, d), (2, 0, 1)).reshape(d, d1 * d)

    grid_spec = pltpu.PrefetchScalarGridSpec(
        num_scalar_prefetch=0,
        grid=(B,),
        in_specs=[
            pl.BlockSpec((1, S, n_in), lambda b: (b, 0, 0)),    # h (per-batch block)
            pl.BlockSpec((n_in, 3 * d), lambda b: (0, 0)),      # fused MLP weight
            pl.BlockSpec((1, 3 * d), lambda b: (0, 0)),         # fused MLP bias
            pl.BlockSpec((d, d1 * d), lambda b: (0, 0)),        # triaffine weight
        ],
        out_specs=pl.BlockSpec((1, S * S, S), lambda b: (b, 0, 0)),
    )
    out = pl.pallas_call(
        _triaffine_scorer_kernel,
        out_shape=jax.ShapeDtypeStruct((B, S * S, S), jnp.float32),
        grid_spec=grid_spec,
        compiler_params=pltpu.CompilerParams(
            dimension_semantics=("parallel",)),
    )(h, w_lmr, b_lmr, w_jik)
    # (B, S*S, S) and (B, S, S, S) share the same row-major memory layout.
    return out.reshape(B, S, S, S)


def _reference(h, wl, bl, wm, bm, wr, br, w_tri):
    """Pure-JAX transcription of the PyTorch forward (eval mode)."""
    def mlp(x, w, b):
        t = x @ w.T + b
        return jnp.where(t >= 0, t, NEG_SLOPE * t)
    left = mlp(h, wl, bl)
    mid = mlp(h, wm, bm)
    right = mlp(h, wr, br)
    xa = jnp.concatenate([left, jnp.ones_like(left[..., :1])], axis=-1)   # bias_x
    w = jnp.einsum('bzk,oikj->bozij', right, w_tri)
    s = jnp.einsum('bxi,bozij,byj->bozxy', xa, w, mid)
    s = jnp.squeeze(s, axis=1)                                            # n_out_label==1
    return jnp.transpose(s, (0, 2, 3, 1))                                 # permute(0,2,3,1)


if __name__ == "__main__":
    B, S = 2, 8
    key = jax.random.PRNGKey(0)
    ks = jax.random.split(key, 8)

    h = jax.random.normal(ks[0], (B, S, N_IN), dtype=jnp.float32)
    wl = jax.random.normal(ks[1], (N_OUT, N_IN), dtype=jnp.float32) * 0.1
    bl = jax.random.normal(ks[2], (N_OUT,), dtype=jnp.float32) * 0.1
    wm = jax.random.normal(ks[3], (N_OUT, N_IN), dtype=jnp.float32) * 0.1
    bm = jax.random.normal(ks[4], (N_OUT,), dtype=jnp.float32) * 0.1
    wr = jax.random.normal(ks[5], (N_OUT, N_IN), dtype=jnp.float32) * 0.1
    br = jax.random.normal(ks[6], (N_OUT,), dtype=jnp.float32) * 0.1
    w_tri = jax.random.normal(
        ks[7], (N_OUT_LABEL, N_OUT + 1, N_OUT, N_OUT), dtype=jnp.float32) * 0.1

    out = triaffine_scorer(h, wl, bl, wm, bm, wr, br, w_tri)
    out = jax.block_until_ready(out)

    ref = _reference(h, wl, bl, wm, bm, wr, br, w_tri)
    assert out.shape == (B, S, S, S), out.shape
    assert jnp.allclose(out, ref, atol=1e-4, rtol=1e-4), \
        float(jnp.max(jnp.abs(out - ref)))
    print("KERNEL_OK")
</pallas_src>

<mosaic_0001>
module attributes {stable_mosaic.version = 11 : i64} {
  func.func @_triaffine_scorer_kernel(%arg0: i32, %arg1: memref<1x8x32xf32, #tpu.memory_space<vmem>>, %arg2: memref<32x48xf32, #tpu.memory_space<vmem>>, %arg3: memref<1x48xf32, #tpu.memory_space<vmem>>, %arg4: memref<16x272xf32, #tpu.memory_space<vmem>>, %arg5: memref<1x64x8xf32, #tpu.memory_space<vmem>>) attributes {dimension_semantics = [#tpu.dimension_semantics<parallel>], iteration_bounds = array<i64: 2>, scalar_prefetch = 0 : i64, scratch_operands = 0 : i64, tpu.core_type = #tpu.core_type<tc>, window_params = [{transform_indices = @transform_0, window_bounds = array<i64: 1, 8, 32>}, {pipeline_mode = #tpu.pipeline_mode<synchronous>, transform_indices = @transform_1, window_bounds = array<i64: 32, 48>}, {pipeline_mode = #tpu.pipeline_mode<synchronous>, transform_indices = @transform_2, window_bounds = array<i64: 1, 48>}, {pipeline_mode = #tpu.pipeline_mode<synchronous>, transform_indices = @transform_3, window_bounds = array<i64: 16, 272>}, {transform_indices = @transform_4, window_bounds = array<i64: 1, 64, 8>}]} {
    %c0 = arith.constant 0 : index
    %c0_0 = arith.constant 0 : index
    %c0_1 = arith.constant 0 : index
    %0 = vector.load %arg1[%c0, %c0_0, %c0_1] : memref<1x8x32xf32, #tpu.memory_space<vmem>>, vector<1x8x32xf32>
    %1 = vector.shape_cast %0 : vector<1x8x32xf32> to vector<8x32xf32>
    %c0_2 = arith.constant 0 : index
    %c0_3 = arith.constant 0 : index
    %2 = vector.load %arg2[%c0_2, %c0_3] : memref<32x48xf32, #tpu.memory_space<vmem>>, vector<32x48xf32>
    %cst = arith.constant dense<0.000000e+00> : vector<8x48xf32>
    %3 = tpu.matmul %1, %2, %cst {dimension_numbers = #tpu.dot_dimension_numbers<[1], [0], [0], [1], [0, 0, 1, 1], [], []>} : vector<8x32xf32>, vector<32x48xf32>, vector<8x48xf32> -> vector<8x48xf32>
    %c0_4 = arith.constant 0 : index
    %c0_5 = arith.constant 0 : index
    %4 = vector.load %arg3[%c0_4, %c0_5] : memref<1x48xf32, #tpu.memory_space<vmem>>, vector<1x48xf32>
    %5 = vector.broadcast %4 : vector<1x48xf32> to vector<8x48xf32>
    %6 = arith.addf %3, %5 : vector<8x48xf32>
    %cst_6 = arith.constant 0.000000e+00 : f32
    %7 = vector.broadcast %cst_6 : f32 to vector<8x48xf32>
    %8 = arith.cmpf oge, %6, %7 : vector<8x48xf32>
    %cst_7 = arith.constant 1.000000e-01 : f32
    %9 = vector.broadcast %cst_7 : f32 to vector<8x48xf32>
    %10 = arith.mulf %9, %6 : vector<8x48xf32>
    %11 = arith.select %8, %6, %10 : vector<8x48xi1>, vector<8x48xf32>
    %12 = vector.extract_strided_slice %11 {offsets = [0, 0], sizes = [8, 16], strides = [1, 1]} : vector<8x48xf32> to vector<8x16xf32>
    %13 = vector.extract_strided_slice %11 {offsets = [0, 16], sizes = [8, 16], strides = [1, 1]} : vector<8x48xf32> to vector<8x16xf32>
    %14 = vector.extract_strided_slice %11 {offsets = [0, 32], sizes = [8, 16], strides = [1, 1]} : vector<8x48xf32> to vector<8x16xf32>
    %c0_8 = arith.constant 0 : index
    %c0_9 = arith.constant 0 : index
    %15 = vector.load %arg4[%c0_8, %c0_9] : memref<16x272xf32, #tpu.memory_space<vmem>>, vector<16x272xf32>
    %cst_10 = arith.constant dense<0.000000e+00> : vector<8x272xf32>
    %16 = tpu.matmul %13, %15, %cst_10 {dimension_numbers = #tpu.dot_dimension_numbers<[1], [0], [0], [1], [0, 0, 1, 1], [], []>} : vector<8x16xf32>, vector<16x272xf32>, vector<8x272xf32> -> vector<8x272xf32>
    %17 = vector.extract_strided_slice %16 {offsets = [0, 256], sizes = [8, 16], strides = [1, 1]} : vector<8x272xf32> to vector<8x16xf32>
    %18 = vector.shape_cast %17 : vector<8x16xf32> to vector<1x8x16xf32>
    %19 = vector.shape_cast %18 : vector<1x8x16xf32> to vector<1x8x16xf32>
    %20 = vector.broadcast %19 : vector<1x8x16xf32> to vector<8x8x16xf32>
    %21 = vector.extract_strided_slice %12 {offsets = [0, 0], sizes = [8, 1], strides = [1, 1]} : vector<8x16xf32> to vector<8x1xf32>
    %22 = vector.shape_cast %21 : vector<8x1xf32> to vector<8x1x1xf32>
    %23 = vector.extract_strided_slice %16 {offsets = [0, 0], sizes = [8, 16], strides = [1, 1]} : vector<8x272xf32> to vector<8x16xf32>
    %24 = vector.shape_cast %23 : vector<8x16xf32> to vector<1x8x16xf32>
    %25 = vector.broadcast %22 : vector<8x1x1xf32> to vector<8x8x16xf32>
    %26 = vector.broadcast %24 : vector<1x8x16xf32> to vector<8x8x16xf32>
    %27 = arith.mulf %25, %26 : vector<8x8x16xf32>
    %28 = arith.addf %20, %27 : vector<8x8x16xf32>
    %29 = vector.extract_strided_slice %12 {offsets = [0, 1], sizes = [8, 1], strides = [1, 1]} : vector<8x16xf32> to vector<8x1xf32>
    %30 = vector.shape_cast %29 : vector<8x1xf32> to vector<8x1x1xf32>
    %31 = vector.extract_strided_slice %16 {offsets = [0, 16], sizes = [8, 16], strides = [1, 1]} : vector<8x272xf32> to vector<8x16xf32>
    %32 = vector.shape_cast %31 : vector<8x16xf32> to vector<1x8x16xf32>
    %33 = vector.broadcast %30 : vector<8x1x1xf32> to vector<8x8x16xf32>
    %34 = vector.broadcast %32 : vector<1x8x16xf32> to vector<8x8x16xf32>
    %35 = arith.mulf %33, %34 : vector<8x8x16xf32>
    %36 = arith.addf %28, %35 : vector<8x8x16xf32>
    %37 = vector.extract_strided_slice %12 {offsets = [0, 2], sizes = [8, 1], strides = [1, 1]} : vector<8x16xf32> to vector<8x1xf32>
    %38 = vector.shape_cast %37 : vector<8x1xf32> to vector<8x1x1xf32>
    %39 = vector.extract_strided_slice %16 {offsets = [0, 32], sizes = [8, 16], strides = [1, 1]} : vector<8x272xf32> to vector<8x16xf32>
    %40 = vector.shape_cast %39 : vector<8x16xf32> to vector<1x8x16xf32>
    %41 = vector.broadcast %38 : vector<8x1x1xf32> to vector<8x8x16xf32>
    %42 = vector.broadcast %40 : vector<1x8x16xf32> to vector<8x8x16xf32>
    %43 = arith.mulf %41, %42 : vector<8x8x16xf32>
    %44 = arith.addf %36, %43 : vector<8x8x16xf32>
    %45 = vector.extract_strided_slice %12 {offsets = [0, 3], sizes = [8, 1], strides = [1, 1]} : vector<8x16xf32> to vector<8x1xf32>
    %46 = vector.shape_cast %45 : vector<8x1xf32> to vector<8x1x1xf32>
    %47 = vector.extract_strided_slice %16 {offsets = [0, 48], sizes = [8, 16], strides = [1, 1]} : vector<8x272xf32> to vector<8x16xf32>
    %48 = vector.shape_cast %47 : vector<8x16xf32> to vector<1x8x16xf32>
    %49 = vector.broadcast %46 : vector<8x1x1xf32> to vector<8x8x16xf32>
    %50 = vector.broadcast %48 : vector<1x8x16xf32> to vector<8x8x16xf32>
    %51 = arith.mulf %49, %50 : vector<8x8x16xf32>
    %52 = arith.addf %44, %51 : vector<8x8x16xf32>
    %53 = vector.extract_strided_slice %12 {offsets = [0, 4], sizes = [8, 1], strides = [1, 1]} : vector<8x16xf32> to vector<8x1xf32>
    %54 = vector.shape_cast %53 : vector<8x1xf32> to vector<8x1x1xf32>
    %55 = vector.extract_strided_slice %16 {offsets = [0, 64], sizes = [8, 16], strides = [1, 1]} : vector<8x272xf32> to vector<8x16xf32>
    %56 = vector.shape_cast %55 : vector<8x16xf32> to vector<1x8x16xf32>
    %57 = vector.broadcast %54 : vector<8x1x1xf32> to vector<8x8x16xf32>
    %58 = vector.broadcast %56 : vector<1x8x16xf32> to vector<8x8x16xf32>
    %59 = arith.mulf %57, %58 : vector<8x8x16xf32>
    %60 = arith.addf %52, %59 : vector<8x8x16xf32>
    %61 = vector.extract_strided_slice %12 {offsets = [0, 5], sizes = [8, 1], strides = [1, 1]} : vector<8x16xf32> to vector<8x1xf32>
    %62 = vector.shape_cast %61 : vector<8x1xf32> to vector<8x1x1xf32>
    %63 = vector.extract_strided_slice %16 {offsets = [0, 80], sizes = [8, 16], strides = [1, 1]} : vector<8x272xf32> to vector<8x16xf32>
    %64 = vector.shape_cast %63 : vector<8x16xf32> to vector<1x8x16xf32>
    %65 = vector.broadcast %62 : vector<8x1x1xf32> to vector<8x8x16xf32>
    %66 = vector.broadcast %64 : vector<1x8x16xf32> to vector<8x8x16xf32>
    %67 = arith.mulf %65, %66 : vector<8x8x16xf32>
    %68 = arith.addf %60, %67 : vector<8x8x16xf32>
    %69 = vector.extract_strided_slice %12 {offsets = [0, 6], sizes = [8, 1], strides = [1, 1]} : vector<8x16xf32> to vector<8x1xf32>
    %70 = vector.shape_cast %69 : vector<8x1xf32> to vector<8x1x1xf32>
    %71 = vector.extract_strided_slice %16 {offsets = [0, 96], sizes = [8, 16], strides = [1, 1]} : vector<8x272xf32> to vector<8x16xf32>
    %72 = vector.shape_cast %71 : vector<8x16xf32> to vector<1x8x16xf32>
    %73 = vector.broadcast %70 : vector<8x1x1xf32> to vector<8x8x16xf32>
    %74 = vector.broadcast %72 : vector<1x8x16xf32> to vector<8x8x16xf32>
    %75 = arith.mulf %73, %74 : vector<8x8x16xf32>
    %76 = arith.addf %68, %75 : vector<8x8x16xf32>
    %77 = vector.extract_strided_slice %12 {offsets = [0, 7], sizes = [8, 1], strides = [1, 1]} : vector<8x16xf32> to vector<8x1xf32>
    %78 = vector.shape_cast %77 : vector<8x1xf32> to vector<8x1x1xf32>
    %79 = vector.extract_strided_slice %16 {offsets = [0, 112], sizes = [8, 16], strides = [1, 1]} : vector<8x272xf32> to vector<8x16xf32>
    %80 = vector.shape_cast %79 : vector<8x16xf32> to vector<1x8x16xf32>
    %81 = vector.broadcast %78 : vector<8x1x1xf32> to vector<8x8x16xf32>
    %82 = vector.broadcast %80 : vector<1x8x16xf32> to vector<8x8x16xf32>
    %83 = arith.mulf %81, %82 : vector<8x8x16xf32>
    %84 = arith.addf %76, %83 : vector<8x8x16xf32>
    %85 = vector.extract_strided_slice %12 {offsets = [0, 8], sizes = [8, 1], strides = [1, 1]} : vector<8x16xf32> to vector<8x1xf32>
    %86 = vector.shape_cast %85 : vector<8x1xf32> to vector<8x1x1xf32>
    %87 = vector.extract_strided_slice %16 {offsets = [0, 128], sizes = [8, 16], strides = [1, 1]} : vector<8x272xf32> to vector<8x16xf32>
    %88 = vector.shape_cast %87 : vector<8x16xf32> to vector<1x8x16xf32>
    %89 = vector.broadcast %86 : vector<8x1x1xf32> to vector<8x8x16xf32>
    %90 = vector.broadcast %88 : vector<1x8x16xf32> to vector<8x8x16xf32>
    %91 = arith.mulf %89, %90 : vector<8x8x16xf32>
    %92 = arith.addf %84, %91 : vector<8x8x16xf32>
    %93 = vector.extract_strided_slice %12 {offsets = [0, 9], sizes = [8, 1], strides = [1, 1]} : vector<8x16xf32> to vector<8x1xf32>
    %94 = vector.shape_cast %93 : vector<8x1xf32> to vector<8x1x1xf32>
    %95 = vector.extract_strided_slice %16 {offsets = [0, 144], sizes = [8, 16], strides = [1, 1]} : vector<8x272xf32> to vector<8x16xf32>
    %96 = vector.shape_cast %95 : vector<8x16xf32> to vector<1x8x16xf32>
    %97 = vector.broadcast %94 : vector<8x1x1xf32> to vector<8x8x16xf32>
    %98 = vector.broadcast %96 : vector<1x8x16xf32> to vector<8x8x16xf32>
    %99 = arith.mulf %97, %98 : vector<8x8x16xf32>
    %100 = arith.addf %92, %99 : vector<8x8x16xf32>
    %101 = vector.extract_strided_slice %12 {offsets = [0, 10], sizes = [8, 1], strides = [1, 1]} : vector<8x16xf32> to vector<8x1xf32>
    %102 = vector.shape_cast %101 : vector<8x1xf32> to vector<8x1x1xf32>
    %103 = vector.extract_strided_slice %16 {offsets = [0, 160], sizes = [8, 16], strides = [1, 1]} : vector<8x272xf32> to vector<8x16xf32>
    %104 = vector.shape_cast %103 : vector<8x16xf32> to vector<1x8x16xf32>
    %105 = vector.broadcast %102 : vector<8x1x1xf32> to vector<8x8x16xf32>
    %106 = vector.broadcast %104 : vector<1x8x16xf32> to vector<8x8x16xf32>
    %107 = arith.mulf %105, %106 : vector<8x8x16xf32>
    %108 = arith.addf %100, %107 : vector<8x8x16xf32>
    %109 = vector.extract_strided_slice %12 {offsets = [0, 11], sizes = [8, 1], strides = [1, 1]} : vector<8x16xf32> to vector<8x1xf32>
    %110 = vector.shape_cast %109 : vector<8x1xf32> to vector<8x1x1xf32>
    %111 = vector.extract_strided_slice %16 {offsets = [0, 176], sizes = [8, 16], strides = [1, 1]} : vector<8x272xf32> to vector<8x16xf32>
    %112 = vector.shape_cast %111 : vector<8x16xf32> to vector<1x8x16xf32>
    %113 = vector.broadcast %110 : vector<8x1x1xf32> to vector<8x8x16xf32>
    %114 = vector.broadcast %112 : vector<1x8x16xf32> to vector<8x8x16xf32>
    %115 = arith.mulf %113, %114 : vector<8x8x16xf32>
    %116 = arith.addf %108, %115 : vector<8x8x16xf32>
    %117 = vector.extract_strided_slice %12 {offsets = [0, 12], sizes = [8, 1], strides = [1, 1]} : vector<8x16xf32> to vector<8x1xf32>
    %118 = vector.shape_cast %117 : vector<8x1xf32> to vector<8x1x1xf32>
    %119 = vector.extract_strided_slice %16 {offsets = [0, 192], sizes = [8, 16], strides = [1, 1]} : vector<8x272xf32> to vector<8x16xf32>
    %120 = vector.shape_cast %119 : vector<8x16xf32> to vector<1x8x16xf32>
    %121 = vector.broadcast %118 : vector<8x1x1xf32> to vector<8x8x16xf32>
    %122 = vector.broadcast %120 : vector<1x8x16xf32> to vector<8x8x16xf32>
    %123 = arith.mulf %121, %122 : vector<8x8x16xf32>
    %124 = arith.addf %116, %123 : vector<8x8x16xf32>
    %125 = vector.extract_strided_slice %12 {offsets = [0, 13], sizes = [8, 1], strides = [1, 1]} : vector<8x16xf32> to vector<8x1xf32>
    %126 = vector.shape_cast %125 : vector<8x1xf32> to vector<8x1x1xf32>
    %127 = vector.extract_strided_slice %16 {offsets = [0, 208], sizes = [8, 16], strides = [1, 1]} : vector<8x272xf32> to vector<8x16xf32>
    %128 = vector.shape_cast %127 : vector<8x16xf32> to vector<1x8x16xf32>
    %129 = vector.broadcast %126 : vector<8x1x1xf32> to vector<8x8x16xf32>
    %130 = vector.broadcast %128 : vector<1x8x16xf32> to vector<8x8x16xf32>
    %131 = arith.mulf %129, %130 : vector<8x8x16xf32>
    %132 = arith.addf %124, %131 : vector<8x8x16xf32>
    %133 = vector.extract_strided_slice %12 {offsets = [0, 14], sizes = [8, 1], strides = [1, 1]} : vector<8x16xf32> to vector<8x1xf32>
    %134 = vector.shape_cast %133 : vector<8x1xf32> to vector<8x1x1xf32>
    %135 = vector.extract_strided_slice %16 {offsets = [0, 224], sizes = [8, 16], strides = [1, 1]} : vector<8x272xf32> to vector<8x16xf32>
    %136 = vector.shape_cast %135 : vector<8x16xf32> to vector<1x8x16xf32>
    %137 = vector.broadcast %134 : vector<8x1x1xf32> to vector<8x8x16xf32>
    %138 = vector.broadcast %136 : vector<1x8x16xf32> to vector<8x8x16xf32>
    %139 = arith.mulf %137, %138 : vector<8x8x16xf32>
    %140 = arith.addf %132, %139 : vector<8x8x16xf32>
    %141 = vector.extract_strided_slice %12 {offsets = [0, 15], sizes = [8, 1], strides = [1, 1]} : vector<8x16xf32> to vector<8x1xf32>
    %142 = vector.shape_cast %141 : vector<8x1xf32> to vector<8x1x1xf32>
    %143 = vector.extract_strided_slice %16 {offsets = [0, 240], sizes = [8, 16], strides = [1, 1]} : vector<8x272xf32> to vector<8x16xf32>
    %144 = vector.shape_cast %143 : vector<8x16xf32> to vector<1x8x16xf32>
    %145 = vector.broadcast %142 : vector<8x1x1xf32> to vector<8x8x16xf32>
    %146 = vector.broadcast %144 : vector<1x8x16xf32> to vector<8x8x16xf32>
    %147 = arith.mulf %145, %146 : vector<8x8x16xf32>
    %148 = arith.addf %140, %147 : vector<8x8x16xf32>
    %149 = vector.shape_cast %148 : vector<8x8x16xf32> to vector<64x16xf32>
    %cst_11 = arith.constant dense<0.000000e+00> : vector<64x8xf32>
    %150 = tpu.matmul %149, %14, %cst_11 {dimension_numbers = #tpu.dot_dimension_numbers<[1], [1], [0], [0], [0, 0, 1, 0], [], []>} : vector<64x16xf32>, vector<8x16xf32>, vector<64x8xf32> -> vector<64x8xf32>
    %c0_12 = arith.constant 0 : index
    %c0_13 = arith.constant 0 : index
    %c0_14 = arith.constant 0 : index
    %151 = vector.load %arg5[%c0_12, %c0_13, %c0_14] : memref<1x64x8xf32, #tpu.memory_space<vmem>>, vector<1x64x8xf32>
    %152 = vector.shape_cast %151 : vector<1x64x8xf32> to vector<64x8xf32>
    %153 = vector.shape_cast %150 : vector<64x8xf32> to vector<1x64x8xf32>
    tpu.vector_store %arg5[%c0_12, %c0_13, %c0_14], %153 {strides = array<i32>} : memref<1x64x8xf32, #tpu.memory_space<vmem>>, vector<1x64x8xf32>,
    return
  }
  func.func @transform_0(%arg0: i32) -> (i32, i32, i32) {
    %c0_i32 = arith.constant 0 : i32
    %c0_i32_0 = arith.constant 0 : i32
    %c0_i32_1 = arith.constant 0 : i32
    return %arg0, %c0_i32, %c0_i32_0 : i32, i32, i32
  }
  func.func @transform_1(%arg0: i32) -> (i32, i32) {
    %c0_i32 = arith.constant 0 : i32
    %c0_i32_0 = arith.constant 0 : i32
    %c0_i32_1 = arith.constant 0 : i32
    return %c0_i32, %c0_i32_0 : i32, i32
  }
  func.func @transform_2(%arg0: i32) -> (i32, i32) {
    %c0_i32 = arith.constant 0 : i32
    %c0_i32_0 = arith.constant 0 : i32
    %c0_i32_1 = arith.constant 0 : i32
    return %c0_i32, %c0_i32_0 : i32, i32
  }
  func.func @transform_3(%arg0: i32) -> (i32, i32) {
    %c0_i32 = arith.constant 0 : i32
    %c0_i32_0 = arith.constant 0 : i32
    %c0_i32_1 = arith.constant 0 : i32
    return %c0_i32, %c0_i32_0 : i32, i32
  }
  func.func @transform_4(%arg0: i32) -> (i32, i32, i32) {
    %c0_i32 = arith.constant 0 : i32
    %c0_i32_0 = arith.constant 0 : i32
    %c0_i32_1 = arith.constant 0 : i32
    return %arg0, %c0_i32, %c0_i32_0 : i32, i32, i32
  }
}

</mosaic_0001>

<bundles_post_ra>
// kernel: tpu_custom_call.1
= control target key start
LH: loop header
LB: loop body
LE: loop exit
PB: predicated region body
PF: predicated region fallthrough
CT: control target
= control target key end

     0   :  { %9 = vsyncpa [#allocation3], 0  ;;  %s3001_s0 = inlined_call_operand.hbm [shape: f32[2,8,32], index: 0, kind: input, shape index: {}]   ;;  %s3002_s1 = inlined_call_operand.hbm [shape: f32[32,48], index: 1, kind: input, shape index: {}]   ;;  %s3003_s2 = inlined_call_operand.vmem [shape: f32[1,48], index: 2, kind: input, shape index: {}]   ;;  %s3004_s3 = inlined_call_operand.hbm [shape: f32[16,272], index: 3, kind: input, shape index: {}]   ;;  %s3005_s4 = inlined_call_operand.vmem [shape: f32[2,64,8], index: 4, kind: output, shape index: {}]  }
   0x1   :  { %11 = vsyncpa [#allocation3 + $0x1], 0 }
   0x2   :  { %12 = vsyncpa [#allocation5], 0  ;;  %s2121_s15 = smov 0   ;;  %s2123_s16 = smov 0  }
   0x3   :  { %s2125_s17 = smov 0   ;;  %s2127_s18 = smov 0  }
   0x4 LB: > { %s149_s21 = sshll.u32 %s3002_s1, 4  ;;  %s2145_s22 = sadd.s32 4294967295, %s2065_s18   ;;  %s2065_s18 = sphi %s2127_s18, %s3012_s18   ;;  %s2061_s17 = sphi %s2125_s17, %s3011_s17   ;;  %s2057_s16 = sphi %s2123_s16, %s3010_s16   ;;  %s2053_s15 = sphi %s2121_s15, %s3009_s15   ;;  %s150_s21 = int_to_ptr.hbm [resolvable:$true] %s149_s21 }
   0x5   : > { %p1754_p0 = scmp.ge.s32.totalorder %s2065_s18, 1  ;;  %p39_p1 = scmp.eq.s32.totalorder %s2145_s22, 0 }
   0x6   : > { %p138_p2 = scmp.lt.s32.totalorder %s2065_s18, 3  ;;  %s2067_s24 = smov [#allocation4]  }
   0x7   : > { %s151_s25 = sshll.u32 %s2067_s24, 4  ;;  %s166_s28 = sshll.u32 %s3004_s3, 4  ;;  %s152_s25 = int_to_ptr.vmem [resolvable:$true] %s151_s25  ;;  %s167_s28 = int_to_ptr.hbm [resolvable:$true] %s166_s28 }
   0x8   : > { %p2150_p3 = pnand %p1754_p0, %p138_p2  ;;  %s2068_s29 = smov [#allocation6]  }
   0x9   : > { %s168_s30 = sshll.u32 %s2068_s29, 4  ;;  %s2069_s5 = smov 128   ;;  %s169_s30 = int_to_ptr.vmem [resolvable:$true] %s168_s30 }
   0xa   : > { %p1794_p4 = pneg %p2150_p3  ;;  %s2070_s6 = smov 8  }
   0xb   : > { %s2071_s7 = smov 384   ;;  %s2072_s8 = smov 24  }
   0xc   : > { %p1795_p5 = pnand %p1794_p4, %p39_p1  ;;  %s2162_s9 = sadd.s32 1, %s2065_s18  }
   0xd   : > { %s22_s10 = ssub.s32 %s2065_s18, %s2162_s9  ;;  %s25_s11 = sadd.s32 1, %s2061_s17 }
   0xe   : > { %1797 = dma.hbm_to_vmem [thread:$0]  (!%p1795_p5), %s150_s21, 512, %s152_s25, [#allocation5], %s2069_s5, %s2069_s5, %s2070_s6  }
   0xf   : > { %1800 = dma.hbm_to_vmem [thread:$0]  (!%p1795_p5), %s167_s28, 768, %s169_s30, [#allocation5], %s2071_s7, %s2071_s7, %s2072_s8  }
  0x10   : > { %p23_p6 = scmp.eq.s32.totalorder %s22_s10, 0  ;;  %p32_p7 = scmp.ne.s32.totalorder %s2061_s17, %s2057_s16 }
  0x11   : > { %p33_p8 = scmp.eq.s32.totalorder %s2065_s18, 0  ;;  %p38_p9 = scmp.ne.s32.totalorder %s2057_s16, %s2053_s15 }
  0x12   : > { %s2173_s12 = scalar_select %p23_p6, %s2061_s17, %s25_s11  }
  0x13   : > { %p2177_p10 = por %p39_p1, %p38_p9  ;;  %p1807_p11 = scmp.lt.s32.totalorder %s2065_s18, 2 }
  0x14   : > { %s182_s14 = sand.u32 1, %s2061_s17   ;;  %s1759_s19 = sshll.u32 %s2065_s18, 3 }
  0x15   : > { %p34_p12 = por %p33_p8, %p32_p7  ;;  %s1758_s20 = sshll.u32 %s182_s14, 3 }
  0x16   : > { %s190_s25 = scalar_lea.hbm %s3001_s0, %s1759_s19  ;;  %s186_s27 = scalar_lea.vmem [#allocation2], %s1758_s20 }
  0x17   : > { %s192_s26 = sshll.u32 %s190_s25, 4  ;;  %s194_s28 = sshll.u32 %s186_s27, 4  ;;  %s193_s26 = int_to_ptr.hbm [resolvable:$true] %s192_s26  ;;  %s195_s28 = int_to_ptr.vmem [resolvable:$true] %s194_s28 }
  0x18   : > { %p2187_p13 = pnand %p1807_p11, %p34_p12  ;;  %s183_s29 = scalar_lea.sflag [#allocation3], %s182_s14 }
  0x19   : > { %s1997_s30 = sshra.s32 %s193_s26, 4  ;;  %s2004_s7 = scalar_lea.hbm %s3001_s0, 16  ;;  %s1998_s30 = int_to_ptr.hbm [resolvable:$true] %s1997_s30 }
  0x1a   : > { %s1999_s18 = scalar_lea.hbm %s1998_s30, 8  ;;  %p2001_p2 = pneg %p2187_p13 }
  0x1b   : > { %p2000_p0 = scmp.ne.s32.totalorder %s1998_s30, %s1999_s18  ;;  %p2005_p6 = scmp.lt.s32.totalorder %s1998_s30, %s3001_s0 }
  0x1c   : > { %p2006_p7 = scmp.lt.s32.totalorder %s2004_s7, %s1999_s18 }
  0x1d   : > { %p2002_p4 = pnand %p2001_p2, %p2000_p0 }
  0x1e   : > { %p2007_p8 = por %p2006_p7, %p2005_p6 }
  0x1f   : > { %p2003_p5 = pneg %p2002_p4 }
  0x21   : > { %p2008_p9 = pnand %p2007_p8, %p2003_p5 }
  0x23   : > { %2011 = shalt.err (!%p2008_p9)
}
  0x24   : > { %1804 = dma.hbm_to_vmem [thread:$0]  (!%p2187_p13), %s193_s26, 128, %s195_s28, %s183_s29  }
  0x25   : > { %203 = sbr.rel (%p2150_p3) target bundleno = 1449 (0x5a9), region = 36  ;;  %s205_s11 = sand.u32 (!%p2150_p3), 1, %s2057_s16  }
  0x26   : > { %s1761_s14 = sshll.u32 (!%p2150_p3), %s205_s11, 3  ;;  %s206_s19 = scalar_lea.sflag (!%p2150_p3), [#allocation3], %s205_s11 }
  0x27   : > { %s209_s20 = scalar_lea.vmem (!%p2150_p3), [#allocation2], %s1761_s14 }
  0x2a   : > { %2044 = dma.done.wait (%p2177_p10), %s206_s19, 128  }
  0x2b   : > { %2046 = vsyncadd (%p2177_p10), %s206_s19, 4294967168 }
  0x2c   : > { %2048 = dma.done.wait (%p39_p1), [#allocation5], 1280  }
  0x2d   : > { %2050 = vsyncadd (%p39_p1), [#allocation5], 4294966016  ;;  %v254_v0 = vld [vmem:[#allocation4 + $0x18] sm:$0xff]  ;;  %v253_v1 = vld [vmem:[#allocation4 + $0x10] sm:$0xff]  ;;  %vm259_vm0 = vcmask 261120   ;;  %v2073_v5 = vmov 3  }
  0x2e   : > { %275 = vmatpush.msra.mxu0 %v254_v0  ;;  %v252_v2 = vld [vmem:[#allocation4 + $0x8] sm:$0xff]  ;;  %v251_v3 = vld [vmem:[#allocation4] sm:$0xff]  ;;  %v250_v4 = vld [vmem:[%s209_s20] sm:$0xff]  ;;  %1874 = vset.pattern.permute.xlu2 %v2073_v5  ;;  %v2074_v6 = vmov 1   ;;  %v2075_v7 = vmov 0   ;;  %s2076_s21 = smov 112  }
  0x2f   : > { %1872 = vset.pattern.permute.xlu1 %v2074_v6  ;;  %1871 = vset.pattern.permute.xlu0 %v2075_v7  ;;  %v1936_v8 = vld [vmem:[%s3003_s2] ss:$0 sm:$0xff]  ;;  %v2077_v14 = vmov 6   ;;  %v2078_v15 = vmov 4   ;;  %v2079_v18 = vmov 2   ;;  %v2080_v23 = vmov 5  }
  0x30   : > { %276 = vmatpush.msra.mxu0 %v253_v1  ;;  %v289_v32 = vld [vmem:[#allocation6 + $0x18] sm:$0xff]  ;;  %v291_v33 = vld [vmem:[#allocation6 + $0x28] sm:$0xff]  ;;  %v286_v34 = vld [vmem:[#allocation6] sm:$0xff]  ;;  %vm295_vm2 = vcmask 130048   ;;  %v2081_v46 = vmov 7   ;;  %v2082_v51 = vmov 8  }
  0x31   : > { %352 = vmatpush.msra.mxu3 %v291_v33  ;;  %v288_v35 = vld [vmem:[#allocation6 + $0x10] sm:$0xff]  ;;  %v290_v36 = vld [vmem:[#allocation6 + $0x20] sm:$0xff]  ;;  %v287_v37 = vld [vmem:[#allocation6 + $0x8] sm:$0xff]  ;;  %v2083_v57 = vmov 9   ;;  %s2084_s24 = smov 96   ;;  %s2085_s25 = smov 80  }
  0x32   : > { %277 = vmatpush.msra.mxu0 %v252_v2  ;;  %s2086_s26 = smov 64   ;;  %s2087_s27 = smov 48   ;;  %vm1658_vm3 = vcmask 64512  }
  0x33   : > { %353 = vmatpush.msra.mxu3 %v288_v35  ;;  %s2088_s28 = smov 32   ;;  %s2089_s15 = smov 16  }
  0x34   : > { %278 = vmatpush.msra.mxu0 %v251_v3  ;;  %p245_p1 = scmp.lt.s32.totalorder %s2145_s22, 1 }
  0x35   : > { %1766 = vmatmul.msk.f32.vlgmr.msra.gmra.mxu0 %vm259_vm0, %v250_v4 }
  0x36   : > { %312 = vmatpush.msrb.mxu0 %v289_v32  ;;  %s3014_s22 = smov (!%p245_p1, %s2145_s22), 1 }
  0x37   : > { %s1781_s29 = sshll.u32 %s3014_s22, 6 }
  0x38   : > { %313 = vmatpush.msrb.mxu0 %v286_v34  ;;  %s249_s5 = scalar_lea.vmem %s3005_s4, %s1781_s29 }
  0x3a   : > { %332 = vmatpush.msra.mxu0 %v290_v36 }
  0x3c   : > { %333 = vmatpush.msra.mxu0 %v287_v37 }
  0xb2   : > { %v280_v9 = vpop.f32.mrf.mxu0 }
  0xb3   : > { %v281_v10 = vadd.f32 %v1936_v8, %v280_v9 }
  0xb5   : > { %vm283_vm1 = vcmp.ge.f32.partialorder %v281_v10, 0.0  ;;  %v284_v11 = vmul.f32 0.1, %v281_v10 }
  0xb7   : > { %v2216_v12 = vsel %vm283_vm1, %v281_v10, %v284_v11 }
  0xb8   : > { %293 = vrot.lane.b32.xlu0 %v2216_v12, %s2076_s21  ;;  %v2221_v13 = vperm.slane %v2216_v12, 0  ;;  %v358_v16 = vrot.slane %v2216_v12, 1  ;;  %v360_v17 = vrot.slane %v2216_v12, 3  ;;  %v359_v21 = vrot.slane %v2216_v12, 2 }
  0xb9   : > { %v361_v22 = vrot.slane %v2216_v12, 4  ;;  %v364_v26 = vrot.slane %v2216_v12, 7  ;;  %v362_v27 = vrot.slane %v2216_v12, 5  ;;  %v363_v28 = vrot.slane %v2216_v12, 6 }
  0xba   : > { %582 = vperm.xlu2 %1874, %v2221_v13   ;;  %422 = vperm.xlu1 %1872, %v2221_v13   ;;  %v2233_v19 = vperm.slane %v358_v16, 0  ;;  %v2235_v20 = vperm.slane %v360_v17, 0  ;;  %v2243_v24 = vperm.slane %v359_v21, 0 }
  0xbb   : > { %v2245_v25 = vperm.slane %v361_v22, 0  ;;  %v2252_v29 = vperm.slane %v364_v26, 0  ;;  %v2254_v30 = vperm.slane %v362_v27, 0  ;;  %v2256_v31 = vperm.slane %v363_v28, 0 }
  0xc0   : > { %374 = vperm.xlu0 %1871, %v2221_v13  }
  0xc2   : > { %1877 = vset.pattern.permute.xlu2 %v2077_v14  ;;  %1875 = vset.pattern.permute.xlu1 %v2078_v15 }
  0xc3   : > { %822 = vperm.xlu2 %1877, %v2221_v13   ;;  %662 = vperm.xlu1 %1875, %v2221_v13  }
  0xc8   : > { %1873 = vset.pattern.permute.xlu0 %v2079_v18 }
  0xc9   : > { %502 = vperm.xlu0 %1873, %v2221_v13  }
  0xcb   : > { %1879 = vset.pattern.permute.xlu2 %v2075_v7  ;;  %1878 = vset.pattern.permute.xlu1 %v2075_v7 }
  0xcc   : > { %386 = vperm.xlu2 %1879, %v2235_v20   ;;  %378 = vperm.xlu1 %1878, %v2233_v19  }
  0xd1   : > { %1876 = vset.pattern.permute.xlu0 %v2080_v23 }
  0xd2   : > { %742 = vperm.xlu0 %1876, %v2221_v13  }
  0xd4   : > { %390 = vperm.xlu2 %1879, %v2245_v25   ;;  %382 = vperm.xlu1 %1878, %v2243_v24  }
  0xda   : > { %1880 = vset.pattern.permute.xlu0 %v2075_v7 }
  0xdb   : > { %402 = vperm.xlu0 %1880, %v2252_v29  }
  0xdc   : > { %398 = vperm.xlu2 %1879, %v2256_v31   ;;  %394 = vperm.xlu1 %1878, %v2254_v30  }
  0xe3   : > { %1882 = vset.pattern.permute.xlu0 %v2074_v6 }
  0xe4   : > { %430 = vperm.xlu0 %1882, %v2243_v24   ;;  %1881 = vset.pattern.permute.xlu2 %v2074_v6 }
  0xe5   : > { %1883 = vset.pattern.permute.xlu1 %v2074_v6  ;;  %426 = vperm.xlu2 %1881, %v2233_v19  }
  0xe6   : > { %434 = vperm.xlu1 %1883, %v2235_v20  }
  0xec   : > { %450 = vperm.xlu0 %1882, %v2252_v29  }
  0xed   : > { %438 = vperm.xlu2 %1881, %v2245_v25  }
  0xee   : > { %442 = vperm.xlu1 %1883, %v2254_v30  }
  0xf4   : > { %1886 = vset.pattern.permute.xlu0 %v2079_v18 }
  0xf5   : > { %522 = vperm.xlu0 %1886, %v2254_v30   ;;  %446 = vperm.xlu2 %1881, %v2256_v31  }
  0xf6   : > { %1884 = vset.pattern.permute.xlu1 %v2079_v18 }
  0xf7   : > { %506 = vperm.xlu1 %1884, %v2233_v19  }
  0xfd   : > { %1887 = vset.pattern.permute.xlu0 %v2073_v5  ;;  %1885 = vset.pattern.permute.xlu2 %v2079_v18 }
  0xfe   : > { %586 = vperm.xlu0 %1887, %v2233_v19   ;;  %510 = vperm.xlu2 %1885, %v2243_v24  }
  0xff   : > { %514 = vperm.xlu1 %1884, %v2235_v20  }
 0x106   : > { %606 = vperm.xlu0 %1887, %v2256_v31   ;;  %518 = vperm.xlu2 %1885, %v2245_v25  }
 0x107   : > { %526 = vperm.xlu1 %1884, %v2256_v31  }
 0x10e   : > { %1891 = vset.pattern.permute.xlu0 %v2078_v15  ;;  %530 = vperm.xlu2 %1885, %v2252_v29  }
 0x10f   : > { %1888 = vset.pattern.permute.xlu1 %v2073_v5  ;;  %670 = vperm.xlu0 %1891, %v2243_v24  }
 0x110   : > { %590 = vperm.xlu1 %1888, %v2243_v24  }
 0x114   : > { %v2282_v38 = vpop.permute.xlu2 %582 }
 0x116   : > { %1889 = vset.pattern.permute.xlu2 %v2073_v5 }
 0x117   : > { %690 = vperm.xlu0 %1891, %v2252_v29   ;;  %594 = vperm.xlu2 %1889, %v2235_v20  }
 0x118   : > { %598 = vperm.xlu1 %1888, %v2245_v25  }
 0x11d   : > { %v2288_v39 = vpop.permute.xlu2 %822 }
 0x11f   : > { %1895 = vset.pattern.permute.xlu0 %v2080_v23  ;;  %602 = vperm.xlu2 %1889, %v2254_v30  }
 0x120   : > { %610 = vperm.xlu1 %1888, %v2252_v29   ;;  %762 = vperm.xlu0 %1895, %v2254_v30  }
 0x126   : > { %v2294_v40 = vpop.permute.xlu2 %386 }
 0x127   : > { %1890 = vset.pattern.permute.xlu2 %v2078_v15 }
 0x128   : > { %1892 = vset.pattern.permute.xlu1 %v2078_v15  ;;  %1896 = vset.pattern.permute.xlu0 %v2077_v14 }
 0x129   : > { %666 = vperm.xlu2 %1890, %v2233_v19   ;;  %674 = vperm.xlu1 %1892, %v2235_v20  }
 0x12a   : > { %v294_v41 = vpop.permute.xlu0 %293  ;;  %826 = vperm.xlu0 %1896, %v2233_v19  }
 0x12b   : > { %1767 = vmatmul.msk.f32.vlgmr.msrb.gmra.mxu0 %vm295_vm2, %v294_v41  ;;  %1769 = vmatmul.msk.f32.vlgmr.msra.gmra.mxu3 %vm295_vm2, %v294_v41 }
 0x12c   : > { %v2304_v42 = vpop.permute.xlu1 %422 }
 0x12e   : > { %v2306_v43 = vpop.permute.xlu2 %390 }
 0x131   : > { %678 = vperm.xlu2 %1890, %v2245_v25   ;;  %682 = vperm.xlu1 %1892, %v2254_v30  }
 0x132   : > { %846 = vperm.xlu0 %1896, %v2256_v31   ;;  %v2343_v54 = vpop.permute.xlu0 %374 }
 0x133   : > { %1768 = vmatmul.msk.f32.vlgmr.msra.gmra.mxu0 %vm295_vm2, %v294_v41 }
 0x135   : > { %v2312_v44 = vpop.permute.xlu1 %662 }
 0x136   : > { %v2314_v45 = vpop.permute.xlu2 %398 }
 0x139   : > { %686 = vperm.xlu2 %1890, %v2256_v31   ;;  %1893 = vset.pattern.permute.xlu1 %v2080_v23 }
 0x13a   : > { %1901 = vset.pattern.permute.xlu0 %v2081_v46  ;;  %746 = vperm.xlu1 %1893, %v2233_v19  }
 0x13b   : > { %910 = vperm.xlu0 %1901, %v2243_v24   ;;  %v2353_v59 = vpop.permute.xlu0 %502 }
 0x13e   : > { %v2320_v47 = vpop.permute.xlu1 %378 }
 0x13f   : > { %v2322_v48 = vpop.permute.xlu2 %426 }
 0x141   : > { %1894 = vset.pattern.permute.xlu2 %v2080_v23 }
 0x142   : > { %750 = vperm.xlu2 %1894, %v2243_v24   ;;  %754 = vperm.xlu1 %1893, %v2235_v20  }
 0x143   : > { %930 = vperm.xlu0 %1901, %v2252_v29  }
 0x144   : > { %v2364_v63 = vpop.permute.xlu0 %742 }
 0x146   : > { %v2328_v49 = vpop.permute.xlu1 %382 }
 0x147   : > { %v2330_v50 = vpop.permute.xlu2 %438 }
 0x14a   : > { %758 = vperm.xlu2 %1894, %v2245_v25   ;;  %766 = vperm.xlu1 %1893, %v2256_v31  }
 0x14b   : > { %1902 = vset.pattern.permute.xlu0 %v2082_v51 }
 0x14c   : > { %982 = vperm.xlu0 %1902, %v2221_v13  }
 0x14d   : > { %v2372_v2 = vpop.permute.xlu0 %402 }
 0x14e   : > { %v2335_v52 = vpop.permute.xlu1 %394 }
 0x14f   : > { %v2337_v53 = vpop.permute.xlu2 %446 }
 0x152   : > { %770 = vperm.xlu2 %1894, %v2252_v29   ;;  %1897 = vset.pattern.permute.xlu1 %v2077_v14 }
 0x153   : > { %830 = vperm.xlu1 %1897, %v2243_v24  }
 0x154   : > { %1002 = vperm.xlu0 %1902, %v2254_v30  }
 0x156   : > { %v431_v5 = vpop.permute.xlu0 %430 }
 0x158   : > { %v2345_v55 = vpop.permute.xlu1 %434  ;;  %v2347_v56 = vpop.permute.xlu2 %510 }
 0x15a   : > { %1898 = vset.pattern.permute.xlu2 %v2077_v14 }
 0x15b   : > { %834 = vperm.xlu2 %1898, %v2235_v20   ;;  %838 = vperm.xlu1 %1897, %v2245_v25  }
 0x15c   : > { %1905 = vset.pattern.permute.xlu0 %v2083_v57 }
 0x15d   : > { %1030 = vperm.xlu0 %1905, %v2221_v13  }
 0x15e   : > { %v451_v8 = vpop.permute.xlu0 %450 }
 0x160   : > { %v443_v58 = vpop.permute.xlu1 %442  ;;  %v2355_v60 = vpop.permute.xlu2 %518 }
 0x163   : > { %842 = vperm.xlu2 %1898, %v2254_v30   ;;  %850 = vperm.xlu1 %1897, %v2252_v29  }
 0x165   : > { %1050 = vperm.xlu0 %1905, %v2254_v30  }
 0x167   : > { %v2394_v11 = vpop.permute.xlu0 %522 }
 0x168   : > { %v2360_v61 = vpop.permute.xlu2 %530 }
 0x169   : > { %v2362_v62 = vpop.permute.xlu1 %506 }
 0x16b   : > { %1900 = vset.pattern.permute.xlu2 %v2081_v46  ;;  %1899 = vset.pattern.permute.xlu1 %v2081_v46 }
 0x16c   : > { %906 = vperm.xlu2 %1900, %v2233_v19   ;;  %902 = vperm.xlu1 %1899, %v2221_v13  }
 0x170   : > { %v587_v17 = vpop.permute.xlu0 %586 }
 0x171   : > { %v2368_v0 = vpop.permute.xlu1 %514  ;;  %v2370_v1 = vpop.permute.xlu2 %594 }
 0x174   : > { %918 = vperm.xlu2 %1900, %v2245_v25   ;;  %914 = vperm.xlu1 %1899, %v2235_v20  }
 0x178   : > { %v2412_v23 = vpop.permute.xlu0 %606 }
 0x179   : > { %v2376_v3 = vpop.permute.xlu1 %526  ;;  %v2378_v4 = vpop.permute.xlu2 %602 }
 0x17c   : > { %926 = vperm.xlu2 %1900, %v2256_v31   ;;  %922 = vperm.xlu1 %1899, %v2254_v30  }
 0x181   : > { %v2426_v33 = vpop.permute.xlu0 %670 }
 0x182   : > { %v2382_v6 = vpop.permute.xlu1 %590 }
 0x183   : > { %v2384_v7 = vpop.permute.xlu2 %666 }
 0x184   : > { %1904 = vset.pattern.permute.xlu2 %v2082_v51  ;;  %1903 = vset.pattern.permute.xlu1 %v2082_v51 }
 0x185   : > { %990 = vperm.xlu2 %1904, %v2243_v24   ;;  %986 = vperm.xlu1 %1903, %v2233_v19  }
 0x189   : > { %v2442_v51 = vpop.permute.xlu0 %690 }
 0x18a   : > { %v2388_v9 = vpop.permute.xlu1 %598 }
 0x18b   : > { %v2390_v10 = vpop.permute.xlu2 %678 }
 0x18d   : > { %998 = vperm.xlu2 %1904, %v2245_v25   ;;  %994 = vperm.xlu1 %1903, %v2235_v20  }
 0x192   : > { %v2396_v14 = vpop.permute.xlu1 %610 }
 0x193   : > { %v2398_v15 = vpop.permute.xlu2 %686 }
 0x195   : > { %1010 = vperm.xlu2 %1904, %v2252_v29   ;;  %1006 = vperm.xlu1 %1903, %v2256_v31  }
 0x19b   : > { %v2402_v16 = vpop.permute.xlu1 %674 }
 0x19c   : > { %v2404_v18 = vpop.permute.xlu2 %750 }
 0x19d   : > { %1907 = vset.pattern.permute.xlu2 %v2083_v57  ;;  %1906 = vset.pattern.permute.xlu1 %v2083_v57 }
 0x19e   : > { %1038 = vperm.xlu2 %1907, %v2243_v24   ;;  %1034 = vperm.xlu1 %1906, %v2233_v19  }
 0x1a3   : > { %v2408_v21 = vpop.permute.xlu1 %682 }
 0x1a4   : > { %v2410_v22 = vpop.permute.xlu2 %758 }
 0x1a6   : > { %1046 = vperm.xlu2 %1907, %v2245_v25   ;;  %1042 = vperm.xlu1 %1906, %v2235_v20  }
 0x1a8   : > { %v2416_v26 = vpop.f32.mrf.mxu0 }
 0x1a9   : > { %v455_v27 = vmul.f32 %v431_v5, %v2416_v26  ;;  %v458_v34 = vmul.f32 %v443_v58, %v2416_v26  ;;  %v454_v36 = vmul.f32 %v2322_v48, %v2416_v26  ;;  %v453_v37 = vmul.f32 %v2304_v42, %v2416_v26  ;;  %v2458_v5 = vpop.permute.xlu0 %762 }
 0x1aa   : > { %v533_v46 = vmul.f32 %v2353_v59, %v2416_v26  ;;  %v457_v48 = vmul.f32 %v2330_v50, %v2416_v26  ;;  %v456_v42 = vmul.f32 %v2345_v55, %v2416_v26  ;;  %v536_v59 = vmul.f32 %v2368_v0, %v2416_v26 }
 0x1ab   : > { %473 = vrot.lane.b32.xlu0 %v455_v27, %s2076_s21  ;;  %v460_v27 = vmul.f32 %v451_v8, %v2416_v26  ;;  %v459_v50 = vmul.f32 %v2337_v53, %v2416_v26  ;;  %v539_v0 = vmul.f32 %v2376_v3, %v2416_v26  ;;  %v534_v8 = vmul.f32 %v2362_v62, %v2416_v26 }
 0x1ac   : > { %v2420_v28 = vpop.permute.xlu2 %770  ;;  %v2422_v32 = vpop.permute.xlu1 %746  ;;  %v614_v3 = vmul.f32 %v587_v17, %v2416_v26  ;;  %v537_v62 = vmul.f32 %v2355_v60, %v2416_v26  ;;  %v617_v17 = vmul.f32 %v2388_v9, %v2416_v26  ;;  %v540_v60 = vmul.f32 %v2360_v61, %v2416_v26 }
 0x1ad   : > { %v615_v61 = vmul.f32 %v2382_v6, %v2416_v26  ;;  %v618_v6 = vmul.f32 %v2378_v4, %v2416_v26 }
 0x1ae   : > { %1058 = vperm.xlu2 %1907, %v2252_v29   ;;  %1054 = vperm.xlu1 %1906, %v2256_v31  }
 0x1b3   : > { %479 = vrot.lane.b32.xlu0 %v458_v34, %s2076_s21 }
 0x1b4   : > { %v2430_v35 = vpop.permute.xlu1 %754 }
 0x1b5   : > { %v2436_v41 = vpop.permute.xlu2 %834 }
 0x1b6   : > { %471 = vrot.lane.b32.xlu2 %v454_v36, %s2076_s21  ;;  %469 = vrot.lane.b32.xlu1 %v453_v37, %s2076_s21  ;;  %v535_v36 = vmul.f32 %v2347_v56, %v2416_v26  ;;  %v2478_v37 = vpop.permute.xlu0 %826  ;;  %v538_v56 = vmul.f32 %v2394_v11, %v2416_v26  ;;  %v613_v11 = vmul.f32 %v2282_v38, %v2416_v26 }
 0x1b7   : > { %v616_v38 = vmul.f32 %v2370_v1, %v2416_v26  ;;  %v619_v1 = vmul.f32 %v2412_v23, %v2416_v26  ;;  %v693_v23 = vmul.f32 %v2312_v44, %v2416_v26  ;;  %v696_v44 = vmul.f32 %v2402_v16, %v2416_v26 }
 0x1b8   : > { %v699_v16 = vmul.f32 %v2398_v15, %v2416_v26  ;;  %v775_v15 = vmul.f32 %v2404_v18, %v2416_v26  ;;  %v777_v18 = vmul.f32 %v2410_v22, %v2416_v26  ;;  %v853_v22 = vmul.f32 %v2288_v39, %v2416_v26 }
 0x1bb   : > { %549 = vrot.lane.b32.xlu0 %v533_v46, %s2084_s24 }
 0x1bc   : > { %v2445_v57 = vpop.permute.xlu1 %766 }
 0x1bd   : > { %v2451_v58 = vpop.permute.xlu2 %842 }
 0x1be   : > { %477 = vrot.lane.b32.xlu2 %v457_v48, %s2076_s21  ;;  %475 = vrot.lane.b32.xlu1 %v456_v42, %s2076_s21 }
 0x1c3   : > { %555 = vrot.lane.b32.xlu0 %v536_v59, %s2084_s24  ;;  %v2496_v59 = vpop.permute.xlu0 %846 }
 0x1c5   : > { %v2463_v34 = vpop.permute.xlu1 %830 }
 0x1c6   : > { %483 = vrot.lane.b32.xlu2 %v460_v27, %s2076_s21  ;;  %v2466_v55 = vpop.permute.xlu2 %906  ;;  %481 = vrot.lane.b32.xlu1 %v459_v50, %s2076_s21 }
 0x1cb   : > { %561 = vrot.lane.b32.xlu0 %v539_v0, %s2084_s24  ;;  %v620_v0 = vmul.f32 %v2396_v14, %v2416_v26  ;;  %v2513_v9 = vpop.permute.xlu0 %910  ;;  %v695_v14 = vmul.f32 %v2426_v33, %v2416_v26  ;;  %v698_v33 = vmul.f32 %v2408_v21, %v2416_v26  ;;  %v773_v21 = vmul.f32 %v2364_v63, %v2416_v26 }
 0x1cc   : > { %v935_v39 = vmul.f32 %v2513_v9, %v2416_v26 }
 0x1cd   : > { %v2476_v53 = vpop.permute.xlu1 %838 }
 0x1ce   : > { %553 = vrot.lane.b32.xlu2 %v535_v36, %s2084_s24  ;;  %v2481_v46 = vpop.permute.xlu2 %918  ;;  %551 = vrot.lane.b32.xlu1 %v534_v8, %s2084_s24 }
 0x1d3   : > { %631 = vrot.lane.b32.xlu0 %v614_v3, %s2085_s25  ;;  %v2529_v3 = vpop.permute.xlu0 %930 }
 0x1d5   : > { %v2490_v48 = vpop.permute.xlu1 %850 }
 0x1d6   : > { %559 = vrot.lane.b32.xlu2 %v538_v56, %s2084_s24  ;;  %v2493_v42 = vpop.permute.xlu2 %926  ;;  %557 = vrot.lane.b32.xlu1 %v537_v62, %s2084_s24 }
 0x1db   : > { %637 = vrot.lane.b32.xlu0 %v617_v17, %s2085_s25  ;;  %v694_v17 = vmul.f32 %v2384_v7, %v2416_v26  ;;  %v2548_v4 = vpop.permute.xlu0 %982  ;;  %v697_v7 = vmul.f32 %v2390_v10, %v2416_v26  ;;  %v700_v10 = vmul.f32 %v2442_v51, %v2416_v26  ;;  %v774_v51 = vmul.f32 %v2422_v32, %v2416_v26 }
 0x1dc   : > { %v778_v32 = vmul.f32 %v2458_v5, %v2416_v26  ;;  %v860_v5 = vmul.f32 %v2490_v48, %v2416_v26 }
 0x1de   : > { %629 = vrot.lane.b32.xlu2 %v613_v11, %s2085_s25  ;;  %563 = vrot.lane.b32.xlu1 %v540_v60, %s2084_s24  ;;  %v2507_v27 = vpop.permute.xlu1 %902 }
 0x1df   : > { %v2509_v50 = vpop.permute.xlu2 %990 }
 0x1e3   : > { %643 = vrot.lane.b32.xlu0 %v620_v0, %s2085_s25 }
 0x1e6   : > { %635 = vrot.lane.b32.xlu2 %v616_v38, %s2085_s25  ;;  %633 = vrot.lane.b32.xlu1 %v615_v61, %s2085_s25  ;;  %v2522_v36 = vpop.permute.xlu1 %914  ;;  %v776_v38 = vmul.f32 %v2430_v35, %v2416_v26  ;;  %v2569_v61 = vpop.permute.xlu0 %1002  ;;  %v779_v35 = vmul.f32 %v2445_v57, %v2416_v26  ;;  %v854_v57 = vmul.f32 %v2478_v37, %v2416_v26 }
 0x1e7   : > { %v2524_v8 = vpop.permute.xlu2 %998 }
 0x1eb   : > { %713 = vrot.lane.b32.xlu0 %v695_v14, %s2086_s26 }
 0x1ee   : > { %641 = vrot.lane.b32.xlu2 %v619_v1, %s2085_s25  ;;  %639 = vrot.lane.b32.xlu1 %v618_v6, %s2085_s25  ;;  %v2537_v56 = vpop.permute.xlu1 %922  ;;  %v1031_v6 = vpop.permute.xlu0 %1030 }
 0x1ef   : > { %v2539_v62 = vpop.permute.xlu2 %1010  ;;  %v938_v9 = vmul.f32 %v2537_v56, %v2416_v26  ;;  %v2664_v56 = vpop.f32.mrf.mxu0 }
 0x1f3   : > { %719 = vrot.lane.b32.xlu0 %v698_v33, %s2086_s26 }
 0x1f6   : > { %711 = vrot.lane.b32.xlu2 %v694_v17, %s2086_s26  ;;  %709 = vrot.lane.b32.xlu1 %v693_v23, %s2086_s26  ;;  %v2600_v23 = vpop.permute.xlu0 %1050 }
 0x1f7   : > { %v2552_v11 = vpop.permute.xlu1 %986 }
 0x1f8   : > { %v2554_v60 = vpop.permute.xlu2 %1038 }
 0x1fb   : > { %789 = vrot.lane.b32.xlu0 %v773_v21, %s2087_s27  ;;  %v857_v21 = vmul.f32 %v2476_v53, %v2416_v26 }
 0x1fe   : > { %717 = vrot.lane.b32.xlu2 %v697_v7, %s2086_s26  ;;  %715 = vrot.lane.b32.xlu1 %v696_v44, %s2086_s26  ;;  %v780_v44 = vmul.f32 %v2420_v28, %v2416_v26  ;;  %v856_v28 = vmul.f32 %v2436_v41, %v2416_v26  ;;  %v858_v41 = vmul.f32 %v2451_v58, %v2416_v26 }
 0x1ff   : > { %v2565_v0 = vpop.permute.xlu1 %994  ;;  %v934_v58 = vmul.f32 %v2466_v55, %v2416_v26  ;;  %v937_v55 = vmul.f32 %v2481_v46, %v2416_v26 }
 0x200   : > { %v2571_v63 = vpop.permute.xlu2 %1046 }
 0x203   : > { %795 = vrot.lane.b32.xlu0 %v776_v38, %s2087_s27 }
 0x206   : > { %723 = vrot.lane.b32.xlu2 %v700_v10, %s2086_s26  ;;  %721 = vrot.lane.b32.xlu1 %v699_v16, %s2086_s26  ;;  %v855_v16 = vmul.f32 %v2463_v34, %v2416_v26  ;;  %v859_v34 = vmul.f32 %v2496_v59, %v2416_v26  ;;  %v933_v59 = vmul.f32 %v2507_v27, %v2416_v26 }
 0x207   : > { %v2580_v14 = vpop.permute.xlu1 %1006  ;;  %v936_v27 = vmul.f32 %v2522_v36, %v2416_v26  ;;  %v940_v36 = vmul.f32 %v2529_v3, %v2416_v26 }
 0x208   : > { %v2584_v1 = vpop.permute.xlu2 %1058 }
 0x20b   : > { %801 = vrot.lane.b32.xlu0 %v779_v35, %s2087_s27 }
 0x20e   : > { %793 = vrot.lane.b32.xlu2 %v775_v15, %s2087_s27  ;;  %791 = vrot.lane.b32.xlu1 %v774_v51, %s2087_s27 }
 0x210   : > { %v2593_v33 = vpop.permute.xlu2 %471  ;;  %v2595_v17 = vpop.permute.xlu1 %1034 }
 0x213   : > { %871 = vrot.lane.b32.xlu0 %v854_v57, %s2088_s28 }
 0x216   : > { %799 = vrot.lane.b32.xlu2 %v778_v32, %s2087_s27  ;;  %797 = vrot.lane.b32.xlu1 %v777_v18, %s2087_s27  ;;  %v2090_v18 = vmov 10  }
 0x217   : > { %1908 = vset.pattern.permute.xlu2 %v2090_v18  ;;  %1909 = vset.pattern.permute.xlu0 %v2090_v18 }
 0x218   : > { %v2610_v7 = vpop.permute.xlu2 %477  ;;  %v1043_v37 = vpop.permute.xlu1 %1042  ;;  %1910 = vset.pattern.permute.xlu1 %v2090_v18 }
 0x21b   : > { %877 = vrot.lane.b32.xlu0 %v857_v21, %s2088_s28 }
 0x21d   : > { %v2615_v38 = vpop.permute.xlu0 %473 }
 0x21e   : > { %869 = vrot.lane.b32.xlu2 %v853_v22, %s2088_s28  ;;  %803 = vrot.lane.b32.xlu1 %v780_v44, %s2087_s27  ;;  %v1061_v44 = vmul.f32 %v1031_v6, %v2664_v56  ;;  %v1064_v6 = vmul.f32 %v1043_v37, %v2664_v56  ;;  %v406_v37 = vmul.f32 %v2320_v47, %v2416_v26 }
 0x220   : > { %v2623_v53 = vpop.permute.xlu2 %483  ;;  %v1055_v10 = vpop.permute.xlu1 %1054 }
 0x223   : > { %883 = vrot.lane.b32.xlu0 %v860_v5, %s2088_s28 }
 0x225   : > { %v2630_v35 = vpop.permute.xlu0 %479 }
 0x226   : > { %875 = vrot.lane.b32.xlu2 %v856_v28, %s2088_s28  ;;  %873 = vrot.lane.b32.xlu1 %v855_v16, %s2088_s28  ;;  %v2676_v16 = vpop.f32.mrf.mxu3 }
 0x228   : > { %v2636_v48 = vpop.permute.xlu2 %553  ;;  %v2638_v51 = vpop.permute.xlu1 %469 }
 0x22b   : > { %953 = vrot.lane.b32.xlu0 %v935_v39, %s2089_s15 }
 0x22d   : > { %v2645_v15 = vpop.permute.xlu0 %549 }
 0x22e   : > { %881 = vrot.lane.b32.xlu2 %v859_v34, %s2088_s28  ;;  %879 = vrot.lane.b32.xlu1 %v858_v41, %s2088_s28  ;;  %v411_v34 = vmul.f32 %v2314_v45, %v2416_v26 }
 0x230   : > { %v2651_v57 = vpop.permute.xlu2 %559  ;;  %v2653_v32 = vpop.permute.xlu1 %475  ;;  %v419_v46 = vadd.f32 %v411_v34, %v2676_v16 }
 0x233   : > { %959 = vrot.lane.b32.xlu0 %v938_v9, %s2089_s15  ;;  %v939_v9 = vmul.f32 %v2493_v42, %v2416_v26 }
 0x235   : > { %v2660_v21 = vpop.permute.xlu0 %555 }
 0x236   : > { %951 = vrot.lane.b32.xlu2 %v934_v58, %s2089_s15  ;;  %949 = vrot.lane.b32.xlu1 %v933_v59, %s2089_s15  ;;  %v1067_v59 = vmul.f32 %v1055_v10, %v2664_v56  ;;  %v409_v10 = vmul.f32 %v2306_v43, %v2416_v26  ;;  %v1065_v43 = vmul.f32 %v2571_v63, %v2664_v56 }
 0x237   : > { %v410_v63 = vmul.f32 %v2335_v52, %v2416_v26  ;;  %v405_v52 = vmul.f32 %v2343_v54, %v2416_v26  ;;  %v408_v54 = vmul.f32 %v2294_v40, %v2416_v26 }
 0x238   : > { %v2667_v22 = vpop.permute.xlu2 %629  ;;  %v482_v5 = vpop.permute.xlu1 %481 }
 0x239   : > { %v499_v58 = vadd.f32 %v482_v5, %v419_v46  ;;  %v1063_v5 = vmul.f32 %v2554_v60, %v2664_v56 }
 0x23b   : > { %1077 = vrot.lane.b32.xlu0 %v1061_v44, %s2076_s21 }
 0x23d   : > { %v562_v28 = vpop.permute.xlu0 %561 }
 0x23e   : > { %957 = vrot.lane.b32.xlu2 %v937_v55, %s2089_s15  ;;  %955 = vrot.lane.b32.xlu1 %v936_v27, %s2089_s15  ;;  %v579_v45 = vadd.f32 %v562_v28, %v499_v58  ;;  %v414_v27 = vadd.f32 %v406_v37, %v2676_v16 }
 0x240   : > { %v2679_v39 = vpop.permute.xlu2 %635  ;;  %v552_v41 = vpop.permute.xlu1 %551  ;;  %v494_v42 = vadd.f32 %v2593_v33, %v414_v27  ;;  %v417_v33 = vadd.f32 %v409_v10, %v2676_v16 }
 0x242   : > { %v574_v28 = vadd.f32 %v552_v41, %v494_v42  ;;  %v497_v60 = vadd.f32 %v2610_v7, %v417_v33  ;;  %v1066_v41 = vmul.f32 %v2600_v23, %v2664_v56  ;;  %v412_v7 = vmul.f32 %v2372_v2, %v2416_v26 }
 0x243   : > { %1083 = vrot.lane.b32.xlu0 %v1064_v6, %s2076_s21  ;;  %v1062_v6 = vmul.f32 %v2595_v17, %v2664_v56  ;;  %v407_v17 = vmul.f32 %v2328_v49, %v2416_v26  ;;  %v1068_v2 = vmul.f32 %v2584_v1, %v2664_v56  ;;  %v413_v33 = vadd.f32 %v405_v52, %v2676_v16 }
 0x244   : > { %v420_v23 = vadd.f32 %v412_v7, %v2676_v16 }
 0x245   : > { %v632_v18 = vpop.permute.xlu0 %631  ;;  %v415_v58 = vadd.f32 %v407_v17, %v2676_v16 }
 0x246   : > { %963 = vrot.lane.b32.xlu2 %v940_v36, %s2089_s15  ;;  %961 = vrot.lane.b32.xlu1 %v939_v9, %s2089_s15  ;;  %v654_v34 = vadd.f32 %v632_v18, %v574_v28  ;;  %v500_v42 = vadd.f32 %v2623_v53, %v420_v23 }
 0x248   : > { %v642_v44 = vpop.permute.xlu2 %641  ;;  %v558_v55 = vpop.permute.xlu1 %557 }
 0x249   : > { %v2695_v3 = vadd.f32 %v642_v44, %v579_v45  ;;  %v577_v37 = vadd.f32 %v558_v55, %v497_v60  ;;  %v495_v45 = vadd.f32 %v2615_v38, %v415_v58  ;;  %v418_v38 = vadd.f32 %v410_v63, %v2676_v16 }
 0x24a   : > { %v416_v58 = vadd.f32 %v408_v54, %v2676_v16 }
 0x24b   : > { %1089 = vrot.lane.b32.xlu0 %v1067_v59, %s2076_s21  ;;  %v575_v27 = vadd.f32 %v2636_v48, %v495_v45 }
 0x24d   : > { %v638_v47 = vpop.permute.xlu0 %637 }
 0x24e   : > { %1081 = vrot.lane.b32.xlu2 %v1063_v5, %s2076_s21  ;;  %1079 = vrot.lane.b32.xlu1 %v1062_v6, %s2076_s21  ;;  %v657_v49 = vadd.f32 %v638_v47, %v577_v37  ;;  %v498_v47 = vadd.f32 %v2630_v35, %v418_v38  ;;  %v493_v35 = vadd.f32 %v2638_v51, %v413_v33 }
 0x24f   : > { %v496_v51 = vadd.f32 %v2653_v32, %v416_v58 }
 0x250   : > { %v712_v46 = vpop.permute.xlu2 %711  ;;  %v564_v36 = vpop.permute.xlu1 %563  ;;  %v578_v53 = vadd.f32 %v2651_v57, %v498_v47  ;;  %v573_v17 = vadd.f32 %v2645_v15, %v493_v35 }
 0x251   : > { %v2708_v9 = vadd.f32 %v712_v46, %v654_v34  ;;  %v580_v28 = vadd.f32 %v564_v36, %v500_v42  ;;  %v576_v15 = vadd.f32 %v2660_v21, %v496_v51 }
 0x252   : > { %v653_v57 = vadd.f32 %v2667_v22, %v573_v17 }
 0x253   : > { %1114 = vperm.xlu0 %1909, %v2233_v19   ;;  %v656_v40 = vadd.f32 %v2679_v39, %v576_v15 }
 0x255   : > { %v644_v18 = vpop.permute.xlu0 %643 }
 0x256   : > { %1087 = vrot.lane.b32.xlu2 %v1066_v41, %s2076_s21  ;;  %1085 = vrot.lane.b32.xlu1 %v1065_v43, %s2076_s21  ;;  %v660_v48 = vadd.f32 %v644_v18, %v580_v28 }
 0x258   : > { %v718_v59 = vpop.permute.xlu2 %717  ;;  %v634_v44 = vpop.permute.xlu1 %633 }
 0x259   : > { %v737_v55 = vadd.f32 %v718_v59, %v657_v49  ;;  %v655_v5 = vadd.f32 %v634_v44, %v575_v27 }
 0x25b   : > { %1134 = vperm.xlu0 %1909, %v2256_v31  }
 0x25d   : > { %v714_v6 = vpop.permute.xlu0 %713 }
 0x25e   : > { %v735_v10 = vadd.f32 %v714_v6, %v655_v5  ;;  %1110 = vperm.xlu2 %1908, %v2221_v13   ;;  %1091 = vrot.lane.b32.xlu1 %v1068_v2, %s2076_s21 }
 0x260   : > { %v724_v34 = vpop.permute.xlu2 %723  ;;  %v640_v46 = vpop.permute.xlu1 %639 }
 0x261   : > { %v740_v1 = vadd.f32 %v724_v34, %v660_v48  ;;  %v658_v60 = vadd.f32 %v640_v46, %v578_v53 }
 0x265   : > { %v720_v36 = vpop.permute.xlu0 %719 }
 0x266   : > { %v738_v41 = vadd.f32 %v720_v36, %v658_v60  ;;  %1122 = vperm.xlu2 %1908, %v2235_v20   ;;  %1118 = vperm.xlu1 %1910, %v2243_v24  }
 0x268   : > { %v794_v43 = vpop.permute.xlu2 %793  ;;  %v710_v18 = vpop.permute.xlu1 %709 }
 0x269   : > { %v815_v37 = vadd.f32 %v794_v43, %v735_v10  ;;  %v733_v45 = vadd.f32 %v710_v18, %v653_v57 }
 0x26d   : > { %v790_v7 = vpop.permute.xlu0 %789 }
 0x26e   : > { %v813_v49 = vadd.f32 %v790_v7, %v733_v45  ;;  %1130 = vperm.xlu2 %1908, %v2254_v30   ;;  %1126 = vperm.xlu1 %1910, %v2245_v25  }
 0x270   : > { %v800_v26 = vpop.permute.xlu2 %799  ;;  %v716_v22 = vpop.permute.xlu1 %715 }
 0x271   : > { %v818_v59 = vadd.f32 %v800_v26, %v738_v41  ;;  %v736_v44 = vadd.f32 %v716_v22, %v656_v40  ;;  %v1013_v22 = vmul.f32 %v2548_v4, %v2664_v56  ;;  %v2091_v4 = vmov 11  }
 0x272   : > { %1913 = vset.pattern.permute.xlu0 %v2091_v4 }
 0x275   : > { %v796_v23 = vpop.permute.xlu0 %795 }
 0x276   : > { %v816_v16 = vadd.f32 %v796_v23, %v736_v44  ;;  %1138 = vperm.xlu1 %1910, %v2252_v29   ;;  %1912 = vset.pattern.permute.xlu2 %v2091_v4 }
 0x278   : > { %v870_v63 = vpop.permute.xlu2 %869  ;;  %v722_v32 = vpop.permute.xlu1 %721 }
 0x279   : > { %v893_v27 = vadd.f32 %v870_v63, %v813_v49  ;;  %v739_v21 = vadd.f32 %v722_v32, %v2695_v3  ;;  %v1018_v63 = vmul.f32 %v2569_v61, %v2664_v56 }
 0x27d   : > { %v802_v42 = vpop.permute.xlu0 %801 }
 0x27e   : > { %v819_v38 = vadd.f32 %v802_v42, %v739_v21  ;;  %v1016_v42 = vmul.f32 %v2565_v0, %v2664_v56  ;;  %1911 = vset.pattern.permute.xlu1 %v2091_v4  ;;  %v2092_v4 = vmov 12  }
 0x280   : > { %v876_v5 = vpop.permute.xlu2 %875  ;;  %v792_v2 = vpop.permute.xlu1 %791 }
 0x281   : > { %v896_v6 = vadd.f32 %v876_v5, %v816_v16  ;;  %v814_v39 = vadd.f32 %v792_v2, %v2708_v9 }
 0x285   : > { %v872_v47 = vpop.permute.xlu0 %871 }
 0x286   : > { %v894_v28 = vadd.f32 %v872_v47, %v814_v39 }
 0x288   : > { %v882_v10 = vpop.permute.xlu2 %881  ;;  %v798_v52 = vpop.permute.xlu1 %797 }
 0x289   : > { %v899_v53 = vadd.f32 %v882_v10, %v819_v38  ;;  %v817_v48 = vadd.f32 %v798_v52, %v737_v55  ;;  %v1015_v55 = vmul.f32 %v2509_v50, %v2664_v56 }
 0x28d   : > { %v878_v34 = vpop.permute.xlu0 %877 }
 0x28e   : > { %v897_v46 = vadd.f32 %v878_v34, %v817_v48 }
 0x290   : > { %v952_v33 = vpop.permute.xlu2 %951  ;;  %v804_v60 = vpop.permute.xlu1 %803 }
 0x291   : > { %v974_v35 = vadd.f32 %v952_v33, %v894_v28  ;;  %v820_v36 = vadd.f32 %v804_v60, %v740_v1  ;;  %v1019_v28 = vmul.f32 %v2580_v14, %v2664_v56 }
 0x295   : > { %v884_v3 = vpop.permute.xlu0 %883 }
 0x296   : > { %v900_v17 = vadd.f32 %v884_v3, %v820_v36 }
 0x298   : > { %v958_v41 = vpop.permute.xlu2 %957  ;;  %v874_v54 = vpop.permute.xlu1 %873 }
 0x299   : > { %v977_v57 = vadd.f32 %v958_v41, %v897_v46  ;;  %v895_v43 = vadd.f32 %v874_v54, %v815_v37 }
 0x29d   : > { %v954_v18 = vpop.permute.xlu0 %953 }
 0x29e   : > { %v975_v9 = vadd.f32 %v954_v18, %v895_v43 }
 0x2a0   : > { %v964_v58 = vpop.permute.xlu2 %963  ;;  %v880_v45 = vpop.permute.xlu1 %879  ;;  %v1023_v40 = vadd.f32 %v1015_v55, %v975_v9 }
 0x2a1   : > { %v980_v51 = vadd.f32 %v964_v58, %v900_v17  ;;  %v898_v7 = vadd.f32 %v880_v45, %v818_v59 }
 0x2a5   : > { %v960_v15 = vpop.permute.xlu0 %959 }
 0x2a6   : > { %v978_v49 = vadd.f32 %v960_v15, %v898_v7 }
 0x2a8   : > { %v1082_v26 = vpop.permute.xlu2 %1081  ;;  %v950_v1 = vpop.permute.xlu1 %949  ;;  %v1026_v32 = vadd.f32 %v1018_v63, %v978_v49 }
 0x2a9   : > { %v2760_v44 = vadd.f32 %v1082_v26, %v1023_v40  ;;  %v973_v37 = vadd.f32 %v950_v1, %v893_v27 }
 0x2ab   : > { %v1021_v23 = vadd.f32 %v1013_v22, %v973_v37 }
 0x2ad   : > { %v1078_v16 = vpop.permute.xlu0 %1077 }
 0x2ae   : > { %v2764_v59 = vadd.f32 %v1078_v16, %v1021_v23 }
 0x2b0   : > { %v1088_v21 = vpop.permute.xlu2 %1087  ;;  %v956_v50 = vpop.permute.xlu1 %955 }
 0x2b1   : > { %v2768_v38 = vadd.f32 %v1088_v21, %v1026_v32  ;;  %v976_v5 = vadd.f32 %v956_v50, %v896_v6  ;;  %v1014_v6 = vmul.f32 %v2552_v11, %v2664_v56 }
 0x2b3   : > { %v1024_v27 = vadd.f32 %v1016_v42, %v976_v5  ;;  %v1022_v46 = vadd.f32 %v1014_v6, %v974_v35  ;;  %v1020_v35 = vmul.f32 %v2539_v62, %v2664_v56 }
 0x2b5   : > { %v1084_v2 = vpop.permute.xlu0 %1083  ;;  %v1028_v9 = vadd.f32 %v1020_v35, %v980_v51 }
 0x2b6   : > { %v1104_v39 = vadd.f32 %v1084_v2, %v1024_v27 }
 0x2b8   : > { %v1111_v47 = vpop.permute.xlu2 %1110  ;;  %v962_v61 = vpop.permute.xlu1 %961 }
 0x2b9   : > { %v1141_v10 = vmul.f32 %v1111_v47, %v2664_v56  ;;  %v979_v52 = vadd.f32 %v962_v61, %v899_v53  ;;  %v1017_v53 = vmul.f32 %v2524_v8, %v2664_v56 }
 0x2bb   : > { %1157 = vrot.lane.b32.xlu2 %v1141_v10, %s2084_s24  ;;  %v1027_v0 = vadd.f32 %v1019_v28, %v979_v52  ;;  %v1025_v41 = vadd.f32 %v1017_v53, %v977_v57 }
 0x2bd   : > { %v1090_v48 = vpop.permute.xlu0 %1089 }
 0x2be   : > { %v1107_v34 = vadd.f32 %v1090_v48, %v1027_v0 }
 0x2c0   : > { %v1123_v33 = vpop.permute.xlu2 %1122  ;;  %v1080_v60 = vpop.permute.xlu1 %1079 }
 0x2c1   : > { %v1144_v36 = vmul.f32 %v1123_v33, %v2664_v56  ;;  %v1102_v3 = vadd.f32 %v1080_v60, %v1022_v46 }
 0x2c3   : > { %1163 = vrot.lane.b32.xlu2 %v1144_v36, %s2084_s24 }
 0x2c5   : > { %v1115_v14 = vpop.permute.xlu0 %1114 }
 0x2c6   : > { %v1142_v17 = vmul.f32 %v1115_v14, %v2664_v56 }
 0x2c8   : > { %1159 = vrot.lane.b32.xlu0 %v1142_v17, %s2084_s24  ;;  %v1086_v54 = vpop.permute.xlu1 %1085  ;;  %v1131_v7 = vpop.permute.xlu2 %1130 }
 0x2c9   : > { %v1105_v11 = vadd.f32 %v1086_v54, %v1025_v41  ;;  %v1146_v62 = vmul.f32 %v1131_v7, %v2664_v56  ;;  %v2093_v41 = vmov 15  }
 0x2cd   : > { %v1135_v43 = vpop.permute.xlu0 %1134 }
 0x2ce   : > { %v1147_v18 = vmul.f32 %v1135_v43, %v2664_v56  ;;  %v2094_v43 = vmov 14  }
 0x2d0   : > { %1169 = vrot.lane.b32.xlu2 %v1147_v18, %s2084_s24  ;;  %v1092_v58 = vpop.permute.xlu1 %1091 }
 0x2d1   : > { %v1108_v45 = vadd.f32 %v1092_v58, %v1028_v9 }
 0x2d8   : > { %1194 = vperm.xlu2 %1912, %v2233_v19   ;;  %v1119_v8 = vpop.permute.xlu1 %1118 }
 0x2d9   : > { %v1143_v57 = vmul.f32 %v1119_v8, %v2664_v56 }
 0x2db   : > { %1161 = vrot.lane.b32.xlu1 %v1143_v57, %s2084_s24 }
 0x2e0   : > { %1206 = vperm.xlu2 %1912, %v2245_v25   ;;  %v1127_v15 = vpop.permute.xlu1 %1126 }
 0x2e1   : > { %v1145_v55 = vmul.f32 %v1127_v15, %v2664_v56 }
 0x2e3   : > { %1167 = vrot.lane.b32.xlu1 %v1146_v62, %s2084_s24  ;;  %1165 = vrot.lane.b32.xlu0 %v1145_v55, %s2084_s24 }
 0x2e8   : > { %1214 = vperm.xlu2 %1912, %v2256_v31   ;;  %v1139_v51 = vpop.permute.xlu1 %1138 }
 0x2e9   : > { %v1148_v49 = vmul.f32 %v1139_v51, %v2664_v56 }
 0x2eb   : > { %1190 = vperm.xlu1 %1911, %v2221_v13   ;;  %1171 = vrot.lane.b32.xlu0 %v1148_v49, %s2084_s24  ;;  %v2095_v49 = vmov 13  }
 0x2f0   : > { %1916 = vset.pattern.permute.xlu2 %v2092_v4 }
 0x2f3   : > { %1202 = vperm.xlu1 %1911, %v2235_v20   ;;  %1198 = vperm.xlu0 %1913, %v2243_v24  }
 0x2fb   : > { %1210 = vperm.xlu1 %1911, %v2254_v30   ;;  %1218 = vperm.xlu0 %1913, %v2252_v29  }
 0x303   : > { %1915 = vset.pattern.permute.xlu1 %v2092_v4  ;;  %1914 = vset.pattern.permute.xlu0 %v2092_v4 }
 0x315   : > { %v1158_v40 = vpop.permute.xlu2 %1157 }
 0x316   : > { %v2803_v26 = vadd.f32 %v1158_v40, %v2764_v59 }
 0x31d   : > { %v1164_v1 = vpop.permute.xlu2 %1163 }
 0x31e   : > { %v2805_v22 = vadd.f32 %v1164_v1, %v1104_v39 }
 0x32a   : > { %v1170_v37 = vpop.permute.xlu2 %1169 }
 0x32b   : > { %v2807_v23 = vadd.f32 %v1170_v37, %v1107_v34 }
 0x332   : > { %v1195_v16 = vpop.permute.xlu2 %1194 }
 0x333   : > { %v1222_v63 = vmul.f32 %v1195_v16, %v2664_v56 }
 0x335   : > { %1239 = vrot.lane.b32.xlu2 %v1222_v63, %s2085_s25 }
 0x33a   : > { %v1207_v32 = vpop.permute.xlu2 %1206  ;;  %v1160_v21 = vpop.permute.xlu0 %1159 }
 0x33b   : > { %v1225_v50 = vmul.f32 %v1207_v32, %v2664_v56  ;;  %v1182_v42 = vadd.f32 %v1160_v21, %v1102_v3 }
 0x33d   : > { %1245 = vrot.lane.b32.xlu2 %v1225_v50, %s2085_s25 }
 0x342   : > { %v1215_v34 = vpop.permute.xlu2 %1214 }
 0x343   : > { %v1227_v33 = vmul.f32 %v1215_v34, %v2664_v56 }
 0x34d   : > { %v1162_v59 = vpop.permute.xlu1 %1161 }
 0x34e   : > { %v1183_v5 = vadd.f32 %v1162_v59, %v2760_v44 }
 0x355   : > { %v1166_v27 = vpop.permute.xlu0 %1165  ;;  %v1168_v2 = vpop.permute.xlu1 %1167 }
 0x356   : > { %v1185_v39 = vadd.f32 %v1166_v27, %v1105_v11  ;;  %v1186_v47 = vadd.f32 %v1168_v2, %v2768_v38 }
 0x35d   : > { %v1172_v61 = vpop.permute.xlu0 %1171  ;;  %v1191_v28 = vpop.permute.xlu1 %1190 }
 0x35e   : > { %v1188_v10 = vadd.f32 %v1172_v61, %v1108_v45  ;;  %v1221_v52 = vmul.f32 %v1191_v28, %v2664_v56 }
 0x360   : > { %1237 = vrot.lane.b32.xlu1 %v1221_v52, %s2085_s25 }
 0x365   : > { %v1199_v0 = vpop.permute.xlu0 %1198  ;;  %v1203_v48 = vpop.permute.xlu1 %1202 }
 0x366   : > { %v1223_v44 = vmul.f32 %v1199_v0, %v2664_v56  ;;  %v1224_v6 = vmul.f32 %v1203_v48, %v2664_v56 }
 0x368   : > { %1241 = vrot.lane.b32.xlu0 %v1223_v44, %s2085_s25  ;;  %1243 = vrot.lane.b32.xlu1 %v1224_v6, %s2085_s25 }
 0x36d   : > { %v1219_v46 = vpop.permute.xlu0 %1218  ;;  %v1211_v38 = vpop.permute.xlu1 %1210 }
 0x36e   : > { %v1228_v60 = vmul.f32 %v1219_v46, %v2664_v56  ;;  %v1226_v36 = vmul.f32 %v1211_v38, %v2664_v56 }
 0x370   : > { %1251 = vrot.lane.b32.xlu2 %v1228_v60, %s2085_s25  ;;  %1249 = vrot.lane.b32.xlu1 %v1227_v33, %s2085_s25 }
 0x371   : > { %1247 = vrot.lane.b32.xlu0 %v1226_v36, %s2085_s25 }
 0x378   : > { %1278 = vperm.xlu2 %1916, %v2243_v24   ;;  %1274 = vperm.xlu1 %1915, %v2233_v19  }
 0x379   : > { %1270 = vperm.xlu0 %1914, %v2221_v13  }
 0x380   : > { %1286 = vperm.xlu2 %1916, %v2245_v25   ;;  %1282 = vperm.xlu1 %1915, %v2235_v20  }
 0x381   : > { %1290 = vperm.xlu0 %1914, %v2254_v30  }
 0x388   : > { %1298 = vperm.xlu2 %1916, %v2252_v29   ;;  %1294 = vperm.xlu1 %1915, %v2256_v31  }
 0x389   : > { %1923 = vset.pattern.permute.xlu0 %v2094_v43 }
 0x38f   : > { %v1240_v3 = vpop.permute.xlu2 %1239 }
 0x390   : > { %v2835_v14 = vadd.f32 %v1240_v3, %v1182_v42  ;;  %1918 = vset.pattern.permute.xlu2 %v2093_v41  ;;  %1917 = vset.pattern.permute.xlu1 %v2094_v43 }
 0x397   : > { %v1246_v53 = vpop.permute.xlu2 %1245 }
 0x398   : > { %v2837_v17 = vadd.f32 %v1246_v53, %v1185_v39 }
 0x3ca   : > { %v1252_v54 = vpop.permute.xlu2 %1251 }
 0x3cb   : > { %v2840_v11 = vadd.f32 %v1252_v54, %v1188_v10 }
 0x3d2   : > { %v1279_v35 = vpop.permute.xlu2 %1278  ;;  %v1238_v18 = vpop.permute.xlu1 %1237 }
 0x3d3   : > { %v1303_v9 = vmul.f32 %v1279_v35, %v2664_v56  ;;  %v2844_v58 = vadd.f32 %v1238_v18, %v2803_v26 }
 0x3d5   : > { %1321 = vrot.lane.b32.xlu2 %v1303_v9, %s2086_s26 }
 0x3da   : > { %v1242_v45 = vpop.permute.xlu0 %1241  ;;  %v1244_v57 = vpop.permute.xlu1 %1243 }
 0x3db   : > { %v1263_v8 = vadd.f32 %v1242_v45, %v1183_v5  ;;  %v2848_v7 = vadd.f32 %v1244_v57, %v2805_v22 }
 0x3dd   : > { %1522 = vperm.xlu2 %1918, %v2235_v20  }
 0x3e2   : > { %v1250_v62 = vpop.permute.xlu1 %1249 }
 0x3e3   : > { %v1248_v15 = vpop.permute.xlu0 %1247  ;;  %v2854_v51 = vadd.f32 %v1250_v62, %v2807_v23 }
 0x3e4   : > { %v2851_v55 = vadd.f32 %v1248_v15, %v1186_v47 }
 0x3e5   : > { %1920 = vset.pattern.permute.xlu2 %v2095_v49 }
 0x3e6   : > { %1366 = vperm.xlu2 %1920, %v2245_v25  }
 0x3ea   : > { %v1275_v26 = vpop.permute.xlu1 %1274 }
 0x3eb   : > { %v1271_v40 = vpop.permute.xlu0 %1270  ;;  %v1302_v22 = vmul.f32 %v1275_v26, %v2664_v56 }
 0x3ec   : > { %v1301_v1 = vmul.f32 %v1271_v40, %v2664_v56 }
 0x3ed   : > { %1319 = vrot.lane.b32.xlu1 %v1302_v22, %s2086_s26 }
 0x3ee   : > { %1317 = vrot.lane.b32.xlu0 %v1301_v1, %s2086_s26  ;;  %1922 = vset.pattern.permute.xlu2 %v2094_v43 }
 0x3ef   : > { %1446 = vperm.xlu2 %1922, %v2245_v25  }
 0x3f3   : > { %v1291_v16 = vpop.permute.xlu0 %1290 }
 0x3f4   : > { %v1306_v18 = vmul.f32 %v1291_v16, %v2664_v56 }
 0x3f5   : > { %1442 = vperm.xlu1 %1917, %v2235_v20  }
 0x3f6   : > { %1454 = vperm.xlu0 %1923, %v2256_v31  }
 0x3f7   : > { %1926 = vset.pattern.permute.xlu2 %v2093_v41 }
 0x3f8   : > { %1526 = vperm.xlu2 %1926, %v2245_v25  }
 0x3fd   : > { %1919 = vset.pattern.permute.xlu1 %v2095_v49 }
 0x3fe   : > { %1924 = vset.pattern.permute.xlu0 %v2095_v49  ;;  %1350 = vperm.xlu1 %1919, %v2221_v13  }
 0x3ff   : > { %1362 = vperm.xlu0 %1924, %v2235_v20   ;;  %v1287_v20 = vpop.permute.xlu2 %1286 }
 0x400   : > { %1927 = vset.pattern.permute.xlu2 %v2095_v49  ;;  %v1305_v5 = vmul.f32 %v1287_v20, %v2664_v56 }
 0x401   : > { %1354 = vperm.xlu2 %1927, %v2233_v19  }
 0x406   : > { %1921 = vset.pattern.permute.xlu1 %v2094_v43 }
 0x407   : > { %1374 = vperm.xlu0 %1924, %v2256_v31   ;;  %1430 = vperm.xlu1 %1921, %v2221_v13  }
 0x409   : > { %1929 = vset.pattern.permute.xlu2 %v2094_v43 }
 0x40a   : > { %1434 = vperm.xlu2 %1929, %v2233_v19  }
 0x40f   : > { %1370 = vperm.xlu0 %1924, %v2254_v30   ;;  %1925 = vset.pattern.permute.xlu1 %v2093_v41 }
 0x410   : > { %1510 = vperm.xlu1 %1925, %v2221_v13   ;;  %v1299_v13 = vpop.permute.xlu2 %1298 }
 0x411   : > { %v1308_v3 = vmul.f32 %v1299_v13, %v2664_v56 }
 0x412   : > { %1458 = vperm.xlu2 %1929, %v2252_v29  }
 0x417   : > { %1931 = vset.pattern.permute.xlu0 %v2093_v41 }
 0x418   : > { %1514 = vperm.xlu0 %1931, %v2233_v19   ;;  %1534 = vperm.xlu1 %1925, %v2256_v31   ;;  %v1283_v31 = vpop.permute.xlu1 %1282 }
 0x41a   : > { %1933 = vset.pattern.permute.xlu2 %v2093_v41 }
 0x41b   : > { %1538 = vperm.xlu2 %1933, %v2252_v29  }
 0x420   : > { %1518 = vperm.xlu0 %1931, %v2243_v24   ;;  %1928 = vset.pattern.permute.xlu1 %v2095_v49  ;;  %v1295_v37 = vpop.permute.xlu1 %1294 }
 0x421   : > { %1378 = vperm.xlu1 %1928, %v2252_v29   ;;  %v1304_v29 = vmul.f32 %v1283_v31, %v2664_v56  ;;  %v1307_v23 = vmul.f32 %v1295_v37, %v2664_v56 }
 0x423   : > { %1935 = vset.pattern.permute.xlu2 %v2094_v43 }
 0x424   : > { %1438 = vperm.xlu2 %1935, %v2243_v24  }
 0x429   : > { %1930 = vset.pattern.permute.xlu1 %v2094_v43 }
 0x42a   : > { %1450 = vperm.xlu1 %1930, %v2254_v30  }
 0x42f   : > { %v1322_v19 = vpop.permute.xlu2 %1321 }
 0x430   : > { %v2885_v25 = vadd.f32 %v1322_v19, %v1263_v8 }
 0x432   : > { %1932 = vset.pattern.permute.xlu1 %v2093_v41 }
 0x433   : > { %1530 = vperm.xlu1 %1932, %v2254_v30  }
 0x437   : > { %v1523_v63 = vpop.permute.xlu2 %1522 }
 0x438   : > { %v1544_v28 = vmul.f32 %v1523_v63, %v2664_v56 }
 0x43b   : > { %1934 = vset.pattern.permute.xlu1 %v2095_v49 }
 0x43c   : > { %1358 = vperm.xlu1 %1934, %v2243_v24  }
 0x444   : > { %1323 = vrot.lane.b32.xlu1 %v1304_v29, %s2086_s26 }
 0x44c   : > { %1589 = vrot.lane.b32.xlu1 %v2216_v12, %s2084_s24  ;;  %v1367_v12 = vpop.permute.xlu2 %1366 }
 0x44d   : > { %v1385_v47 = vmul.f32 %v1367_v12, %v2664_v56 }
 0x454   : > { %1329 = vrot.lane.b32.xlu1 %v1307_v23, %s2086_s26  ;;  %v1447_v39 = vpop.permute.xlu2 %1446 }
 0x455   : > { %v1465_v48 = vmul.f32 %v1447_v39, %v2664_v56 }
 0x45c   : > { %v1527_v0 = vpop.permute.xlu2 %1526 }
 0x45d   : > { %v1545_v38 = vmul.f32 %v1527_v0, %v2664_v56 }
 0x45f   : > { %v1320_v30 = vpop.permute.xlu1 %1319 }
 0x460   : > { %v1318_v32 = vpop.permute.xlu0 %1317  ;;  %v2900_v24 = vadd.f32 %v1320_v30, %v2835_v14 }
 0x461   : > { %v2897_v21 = vadd.f32 %v1318_v32, %v2844_v58 }
 0x464   : > { %v1355_v46 = vpop.permute.xlu2 %1354 }
 0x465   : > { %v1382_v41 = vmul.f32 %v1355_v46, %v2664_v56 }
 0x467   : > { %v1443_v42 = vpop.permute.xlu1 %1442 }
 0x468   : > { %v1455_v50 = vpop.permute.xlu0 %1454  ;;  %v1464_v59 = vmul.f32 %v1443_v42, %v2664_v56 }
 0x469   : > { %v1467_v44 = vmul.f32 %v1455_v50, %v2664_v56 }
 0x46a   : > { %1483 = vrot.lane.b32.xlu0 %v1464_v59, %s2088_s28 }
 0x46c   : > { %v1435_v14 = vpop.permute.xlu2 %1434 }
 0x46d   : > { %v1462_v9 = vmul.f32 %v1435_v14, %v2664_v56 }
 0x470   : > { %v1351_v27 = vpop.permute.xlu1 %1350 }
 0x471   : > { %v1363_v4 = vpop.permute.xlu0 %1362  ;;  %v1381_v6 = vmul.f32 %v1351_v27, %v2664_v56 }
 0x472   : > { %v1384_v2 = vmul.f32 %v1363_v4, %v2664_v56  ;;  %1325 = vrot.lane.b32.xlu0 %v1305_v5, %s2086_s26 }
 0x474   : > { %1403 = vrot.lane.b32.xlu2 %v1384_v2, %s2087_s27  ;;  %v1459_v58 = vpop.permute.xlu2 %1458 }
 0x475   : > { %v1468_v8 = vmul.f32 %v1459_v58, %v2664_v56 }
 0x479   : > { %v1375_v61 = vpop.permute.xlu0 %1374  ;;  %v1431_v52 = vpop.permute.xlu1 %1430 }
 0x47a   : > { %v1387_v10 = vmul.f32 %v1375_v61, %v2664_v56  ;;  %1405 = vrot.lane.b32.xlu0 %v1385_v47, %s2087_s27  ;;  %v1461_v33 = vmul.f32 %v1431_v52, %v2664_v56 }
 0x47c   : > { %1563 = vrot.lane.b32.xlu2 %v1544_v28, %s2089_s15  ;;  %1409 = vrot.lane.b32.xlu1 %v1387_v10, %s2087_s27  ;;  %v1539_v49 = vpop.permute.xlu2 %1538 }
 0x47d   : > { %v1548_v26 = vmul.f32 %v1539_v49, %v2664_v56 }
 0x481   : > { %v1371_v43 = vpop.permute.xlu0 %1370 }
 0x482   : > { %1485 = vrot.lane.b32.xlu0 %v1465_v48, %s2088_s28  ;;  %v1511_v34 = vpop.permute.xlu1 %1510  ;;  %v1386_v15 = vmul.f32 %v1371_v43, %v2664_v56 }
 0x483   : > { %v1541_v53 = vmul.f32 %v1511_v34, %v2664_v56 }
 0x484   : > { %1489 = vrot.lane.b32.xlu1 %v1467_v44, %s2088_s28  ;;  %1397 = vrot.lane.b32.xlu2 %v1381_v6, %s2087_s27  ;;  %v1439_v29 = vpop.permute.xlu2 %1438 }
 0x485   : > { %v1463_v23 = vmul.f32 %v1439_v29, %v2664_v56 }
 0x48a   : > { %1565 = vrot.lane.b32.xlu0 %v1545_v38, %s2089_s15  ;;  %v1535_v60 = vpop.permute.xlu1 %1534  ;;  %v1515_v57 = vpop.permute.xlu0 %1514 }
 0x48b   : > { %v1547_v36 = vmul.f32 %v1535_v60, %v2664_v56  ;;  %v1542_v62 = vmul.f32 %v1515_v57, %v2664_v56 }
 0x48c   : > { %1477 = vrot.lane.b32.xlu2 %v1461_v33, %s2088_s28 }
 0x48d   : > { %1569 = vrot.lane.b32.xlu1 %v1547_v36, %s2089_s15 }
 0x492   : > { %1331 = vrot.lane.b32.xlu0 %v1308_v3, %s2086_s26  ;;  %v1519_v22 = vpop.permute.xlu0 %1518 }
 0x493   : > { %v1379_v54 = vpop.permute.xlu1 %1378  ;;  %v1543_v19 = vmul.f32 %v1519_v22, %v2664_v56 }
 0x494   : > { %1557 = vrot.lane.b32.xlu2 %v1541_v53, %s2089_s15  ;;  %v1388_v35 = vmul.f32 %v1379_v54, %v2664_v56 }
 0x495   : > { %1399 = vrot.lane.b32.xlu1 %v1382_v41, %s2087_s27 }
 0x49a   : > { %1411 = vrot.lane.b32.xlu0 %v1388_v35, %s2087_s27 }
 0x49c   : > { %1327 = vrot.lane.b32.xlu2 %v1306_v18, %s2086_s26  ;;  %v1451_v45 = vpop.permute.xlu1 %1450 }
 0x49d   : > { %1479 = vrot.lane.b32.xlu1 %v1462_v9, %s2088_s28  ;;  %v1466_v1 = vmul.f32 %v1451_v45, %v2664_v56 }
 0x4a2   : > { %1491 = vrot.lane.b32.xlu0 %v1468_v8, %s2088_s28 }
 0x4a4   : > { %1407 = vrot.lane.b32.xlu2 %v1386_v15, %s2087_s27 }
 0x4a5   : > { %1559 = vrot.lane.b32.xlu1 %v1542_v62, %s2089_s15  ;;  %v1531_v40 = vpop.permute.xlu1 %1530 }
 0x4a6   : > { %v1546_v31 = vmul.f32 %v1531_v40, %v2664_v56 }
 0x4aa   : > { %1571 = vrot.lane.b32.xlu0 %v1548_v26, %s2089_s15 }
 0x4ac   : > { %1487 = vrot.lane.b32.xlu2 %v1466_v1, %s2088_s28 }
 0x4ae   : > { %v1359_v20 = vpop.permute.xlu1 %1358 }
 0x4af   : > { %v1383_v13 = vmul.f32 %v1359_v20, %v2664_v56 }
 0x4b1   : > { %1401 = vrot.lane.b32.xlu1 %v1383_v13, %s2087_s27 }
 0x4b2   : > { %1561 = vrot.lane.b32.xlu0 %v1543_v19, %s2089_s15 }
 0x4b4   : > { %1567 = vrot.lane.b32.xlu2 %v1546_v31, %s2089_s15 }
 0x4b6   : > { %v1324_v37 = vpop.permute.xlu1 %1323 }
 0x4b7   : > { %v1344_v30 = vadd.f32 %v1324_v37, %v2848_v7 }
 0x4bc   : > { %1481 = vrot.lane.b32.xlu2 %v1463_v23, %s2088_s28 }
 0x4be   : > { %v1590_v16 = vpop.permute.xlu1 %1589 }
 0x4bf   : > { %1770 = vmatpush.xpose.msk.msra.mxu1 %vm295_vm2, %v1590_v16  ;;  %1782 = vmatpush.xpose.msk.msra.mxu2 %vm295_vm2, %v1590_v16 }
 0x4c0   : > { %1783 = vmatpush.xpose.msk.msrb.mxu3 %vm295_vm2, %v1590_v16 }
 0x4c6   : > { %v1330_v4 = vpop.permute.xlu1 %1329 }
 0x4c7   : > { %v1347_v6 = vadd.f32 %v1330_v4, %v2854_v51 }
 0x4ce   : > { %v1404_v63 = vpop.permute.xlu2 %1403 }
 0x4cf   : > { %v1424_v50 = vadd.f32 %v1404_v63, %v1344_v30 }
 0x4d6   : > { %v1564_v32 = vpop.permute.xlu2 %1563 }
 0x4dc   : > { %v1484_v42 = vpop.permute.xlu0 %1483 }
 0x4dd   : > { %v1504_v59 = vadd.f32 %v1484_v42, %v1424_v50 }
 0x4de   : > { %v1398_v12 = vpop.permute.xlu2 %1397 }
 0x4df   : > { %v1584_v5 = vadd.f32 %v1564_v32, %v1504_v59  ;;  %v1421_v2 = vadd.f32 %v1398_v12, %v2897_v21 }
 0x4e1   : > { %1774 = vmatmul.msk.f32.vlgmr.msra.gmra.mxu2 %vm295_vm2, %v1584_v5 }
 0x4e4   : > { %v1326_v56 = vpop.permute.xlu0 %1325 }
 0x4e5   : > { %v1345_v0 = vadd.f32 %v1326_v56, %v2837_v17 }
 0x4e6   : > { %v1478_v27 = vpop.permute.xlu2 %1477 }
 0x4e7   : > { %v1501_v39 = vadd.f32 %v1478_v27, %v1421_v2 }
 0x4ec   : > { %v1406_v47 = vpop.permute.xlu0 %1405 }
 0x4ed   : > { %v1425_v44 = vadd.f32 %v1406_v47, %v1345_v0 }
 0x4ee   : > { %v1558_v61 = vpop.permute.xlu2 %1557  ;;  %v1410_v28 = vpop.permute.xlu1 %1409 }
 0x4ef   : > { %v1581_v10 = vadd.f32 %v1558_v61, %v1501_v39  ;;  %v1427_v46 = vadd.f32 %v1410_v28, %v1347_v6 }
 0x4f1   : > { %1771 = vmatmul.msk.f32.vlgmr.msra.gmra.mxu1 %vm295_vm2, %v1581_v10 }
 0x4f4   : > { %v1486_v7 = vpop.permute.xlu0 %1485 }
 0x4f5   : > { %v1505_v34 = vadd.f32 %v1486_v7, %v1425_v44 }
 0x4f6   : > { %v1328_v52 = vpop.permute.xlu2 %1327  ;;  %v1490_v48 = vpop.permute.xlu1 %1489 }
 0x4f7   : > { %v1507_v60 = vadd.f32 %v1490_v48, %v1427_v46  ;;  %v1346_v17 = vadd.f32 %v1328_v52, %v2851_v55 }
 0x4fc   : > { %v1566_v38 = vpop.permute.xlu0 %1565 }
 0x4fd   : > { %v1585_v33 = vadd.f32 %v1566_v38, %v1505_v34 }
 0x4fe   : > { %v1408_v21 = vpop.permute.xlu2 %1407 }
 0x4ff   : > { %1775 = vmatmul.msk.f32.gmra.mxu2 %vm295_vm2, %v1585_v33  ;;  %v1570_v36 = vpop.permute.xlu1 %1569  ;;  %v1426_v54 = vadd.f32 %v1408_v21, %v1346_v17 }
 0x500   : > { %v1587_v3 = vadd.f32 %v1570_v36, %v1507_v60 }
 0x502   : > { %1777 = vmatmul.msk.f32.vlgmr.msrb.gmra.mxu3 %vm295_vm2, %v1587_v3 }
 0x504   : > { %v1332_v14 = vpop.permute.xlu0 %1331 }
 0x505   : > { %v1348_v57 = vadd.f32 %v1332_v14, %v2840_v11 }
 0x506   : > { %v1488_v53 = vpop.permute.xlu2 %1487 }
 0x507   : > { %v1400_v41 = vpop.permute.xlu1 %1399  ;;  %v1506_v43 = vadd.f32 %v1488_v53, %v1426_v54 }
 0x508   : > { %v1422_v58 = vadd.f32 %v1400_v41, %v2900_v24 }
 0x50c   : > { %v1412_v51 = vpop.permute.xlu0 %1411 }
 0x50d   : > { %v1428_v49 = vadd.f32 %v1412_v51, %v1348_v57 }
 0x50e   : > { %v1568_v35 = vpop.permute.xlu2 %1567 }
 0x50f   : > { %v1586_v18 = vadd.f32 %v1568_v35, %v1506_v43  ;;  %v1480_v9 = vpop.permute.xlu1 %1479 }
 0x510   : > { %v1502_v8 = vadd.f32 %v1480_v9, %v1422_v58 }
 0x511   : > { %1776 = vmatmul.msk.f32.gmra.mxu2 %vm295_vm2, %v1586_v18 }
 0x514   : > { %v1492_v45 = vpop.permute.xlu0 %1491 }
 0x515   : > { %v1508_v55 = vadd.f32 %v1492_v45, %v1428_v49 }
 0x516   : > { %v1482_v24 = vpop.permute.xlu2 %1481 }
 0x517   : > { %v1560_v15 = vpop.permute.xlu1 %1559 }
 0x518   : > { %v1582_v62 = vadd.f32 %v1560_v15, %v1502_v8 }
 0x51a   : > { %1772 = vmatmul.msk.f32.gmra.mxu1 %vm295_vm2, %v1582_v62 }
 0x51c   : > { %v1572_v40 = vpop.permute.xlu0 %1571 }
 0x51d   : > { %v1588_v26 = vadd.f32 %v1572_v40, %v1508_v55 }
 0x51f   : > { %1778 = vmatmul.msk.f32.gmra.mxu3 %vm295_vm2, %v1588_v26 }
 0x523   : > { %v1402_v1 = vpop.permute.xlu1 %1401 }
 0x524   : > { %v1423_v22 = vadd.f32 %v1402_v1, %v2885_v25  ;;  %v1562_v13 = vpop.permute.xlu0 %1561 }
 0x526   : > { %v1503_v20 = vadd.f32 %v1482_v24, %v1423_v22 }
 0x528   : > { %v1583_v19 = vadd.f32 %v1562_v13, %v1503_v20 }
 0x52a   : > { %1773 = vmatmul.msk.f32.gmra.mxu1 %vm295_vm2, %v1583_v19 }
 0x564   : > { %v1643_v11 = vpop.f32.mrf.mxu2 }
 0x565   : > { %1662 = vst.msk [vmem:[%s249_s5 + $0x18] sm:$0xff] %vm1658_vm3, %v1643_v11 }
 0x56e   : > { %v1634_v31 = vpop.f32.mrf.mxu1 }
 0x56f   : > { %1659 = vst.msk [vmem:[%s249_s5] sm:$0xff] %vm1658_vm3, %v1634_v31 }
 0x582   : > { %v1646_v25 = vpop.f32.mrf.mxu2 }
 0x583   : > { %1663 = vst.msk [vmem:[%s249_s5 + $0x20] sm:$0xff] %vm1658_vm3, %v1646_v25 }
 0x585   : > { %v1652_v29 = vpop.f32.mrf.mxu3 }
 0x586   : > { %1665 = vst.msk [vmem:[%s249_s5 + $0x30] sm:$0xff] %vm1658_vm3, %v1652_v29 }
 0x594   : > { %v1649_v37 = vpop.f32.mrf.mxu2 }
 0x595   : > { %1664 = vst.msk [vmem:[%s249_s5 + $0x28] sm:$0xff] %vm1658_vm3, %v1649_v37 }
 0x597   : > { %v1637_v23 = vpop.f32.mrf.mxu1 }
 0x598   : > { %1660 = vst.msk [vmem:[%s249_s5 + $0x8] sm:$0xff] %vm1658_vm3, %v1637_v23 }
 0x5a2   : > { %v1655_v16 = vpop.f32.mrf.mxu3 }
 0x5a3   : > { %1666 = vst.msk [vmem:[%s249_s5 + $0x38] sm:$0xff] %vm1658_vm3, %v1655_v16 }
 0x5a7   : > { %v1640_v63 = vpop.f32.mrf.mxu1 }
 0x5a8   : > { %1661 = vst.msk [vmem:[%s249_s5 + $0x10] sm:$0xff] %vm1658_vm3, %v1640_v63 }
 0x5a9 PF: > { %p15_p3 = scmp.ge.s32.totalorder %s2162_s9, 4   ;;  %s3009_s15 = smov %s2057_s16 }
 0x5aa   : > { %s3010_s16 = smov %s2061_s17  ;;  %s3011_s17 = smov %s2173_s12 }
 0x5ab   : > { %s3012_s18 = smov %s2162_s9  ;;  %17 = sbr.rel (!%p15_p3) target bundleno = 4 (0x4), region = 84 }
 0x5b0   :  { %1688 = vsyncpa [#allocation3], 1 }
 0x5b1   :  { %1690 = vsyncpa [#allocation3 + $0x1], 1 }
 0x5b2   :  { %1691 = vsyncpa [#allocation5], 1 }

</bundles_post_ra>
